<compile_context>
chip_gen: v7x
topology: tpu7x:2x2x1
jax: 0.10.0
libtpu: 0.0.40
codegen_flags: <defaults>
</compile_context>

<pallas_src>
import functools
import numpy as np
import jax
import jax.numpy as jnp
from jax.experimental import pallas as pl
from jax.experimental.pallas import tpu as pltpu

K = 7        # kernel_size (must be 3 or 7); 7 matches the PyTorch default
PAD = 3      # padding = 3 if kernel_size == 7 else 1
LANES = 128  # TPU vreg lane width


def _round_up(x, m):
    return (x + m - 1) // m * m


def _lane_roll_right(x, shift):
    """Static right-rotation along the last (lane) axis via slices + concat."""
    n = x.shape[-1]
    shift = shift % n
    if shift == 0:
        return x
    return jnp.concatenate([x[..., n - shift:], x[..., :n - shift]], axis=-1)


def _spatial_attention_kernel(x_ref, wtab_ref, o_ref, *, npb, stride):
    # x_ref:    (Bt, C, H, W)  VMEM -- one batch tile of the input
    # wtab_ref: (K*K, 128)     VMEM -- per-tap lane-weight table (see wrapper)
    # o_ref:    (Bt, 1, H, W)  VMEM
    Bt, C, H, W = x_ref.shape
    Hp = H + 2 * PAD
    n_slabs = Bt // npb

    # ---- channel reduction: chunked running sum + running max ---------------
    ssum = jnp.zeros((Bt, H, W), jnp.float32)
    cmax = jnp.full((Bt, H, W), -jnp.inf, jnp.float32)
    cchunk = min(C, 16)
    c0 = 0
    while c0 < C:                          # static (trace-time) chunk loop
        cc = min(cchunk, C - c0)
        chunk = x_ref[:, c0:c0 + cc, :, :].astype(jnp.float32)
        ssum = ssum + jnp.sum(chunk, axis=1)
        cmax = jnp.maximum(cmax, jnp.max(chunk, axis=1))
        c0 += cc
    avg = ssum * (1.0 / C)                 # reciprocal multiply, no divide
    # TODO(synk): for very large C, reshape to a lane-dense (Bt, C, H*W) layout
    # for this reduction; negligible at small C so not done here.

    for s in range(n_slabs):               # static unrolled loop over slabs
        # ---- build the zero-bordered, lane-packed slab in registers --------
        # Group g = (image p, channel c) lives at lanes [(2p+c)*stride, ..+W);
        # all gap/tail lanes are zero, rows [0,PAD) and [PAD+H,Hp) are zero,
        # so both the lane-shift wraps and the conv borders read zeros.
        pieces, pos = [], 0
        for p in range(npb):
            b = s * npb + p
            for c in range(2):
                off = (2 * p + c) * stride
                if off > pos:
                    pieces.append(jnp.zeros((H, off - pos), jnp.float32))
                pieces.append(avg[b] if c == 0 else cmax[b])
                pos = off + W
        if pos < LANES:
            pieces.append(jnp.zeros((H, LANES - pos), jnp.float32))
        rows = jnp.concatenate(pieces, axis=1)                 # (H, 128)
        zrows = jnp.zeros((PAD, LANES), jnp.float32)
        base = jnp.concatenate([zrows, rows, zrows], axis=0)   # (Hp, 128)

        # ---- 7x7 conv: 7 shared lane shifts, 49 aligned full-width FMAs ----
        # Per-ki full-height accumulators keep every tap sublane-aligned; the
        # 7 sublane-offset row slices happen once, in the epilogue.
        accs = [jnp.zeros((Hp, LANES), jnp.float32) for _ in range(K)]
        for kj in range(K):
            shifted = _lane_roll_right(base, (PAD - kj) % LANES)
            for ki in range(K):
                t = ki * K + kj
                w_row = wtab_ref[t:t + 1, :]                   # (1, 128)
                accs[ki] = accs[ki] + shifted * w_row
        final = accs[0][0:H, :]
        for ki in range(1, K):
            final = final + accs[ki][ki:ki + H, :]             # (H, 128)

        # ---- combine the two channel lane-spans, sigmoid, store ------------
        for p in range(npb):
            b = s * npb + p
            off0 = (2 * p) * stride
            off1 = (2 * p + 1) * stride
            conv = final[:, off0:off0 + W] + final[:, off1:off1 + W]
            o_ref[b, 0, :, :] = jax.nn.sigmoid(conv).astype(o_ref.dtype)


def _pick_batch_tile(B, C, H, W, itemsize):
    """Batch tile: big enough to amortize per-step overhead, small enough to
    keep the unrolled in-kernel slab loop / VMEM blocks modest, and capped at
    B//2 (for B >= 2) so the parallel grid has >= 2 steps (v7x megacore)."""
    per_b = max(1, (C + 1) * H * W * itemsize)
    bt = max(1, min(8, (2 << 20) // per_b))
    if B >= 2:
        bt = min(bt, max(1, B // 2))
    return min(bt, B)


def spatial_attention(x, weight):
    """x: (B, C, H, W); weight: (1, 2, K, K). Returns sigmoid(conv([mean_c, max_c]))."""
    B, C, H, W = x.shape
    stride = _round_up(W + PAD, 8)

    # How many batch images (2 groups each: avg, max) fit in one 128-lane slab,
    # keeping >= PAD zero lanes around every data span (incl. the shift wrap).
    npb_max = 0
    while (2 * (npb_max + 1) - 1) * stride + W + PAD <= LANES:
        npb_max += 1
    if npb_max < 1:
        # TODO(synk): fall back to a multi-vreg-wide (unpacked) conv for W > ~58.
        raise NotImplementedError("spatial width too large for lane-packed conv")

    Bt = _pick_batch_tile(B, C, H, W, x.dtype.itemsize)
    npb = 1
    for d in range(min(npb_max, Bt), 0, -1):
        if Bt % d == 0:
            npb = d
            break

    n_steps = -(-B // Bt)
    B_pad = n_steps * Bt
    if B_pad != B:                        # prime/odd B: pad, slice afterwards
        x = jnp.concatenate(
            [x, jnp.zeros((B_pad - B, C, H, W), x.dtype)], axis=0)

    # Per-tap lane-weight table: weight[0, c, ki, kj] broadcast over channel-c
    # lane spans of every packed image, zeros in the gap lanes.
    lane_tpl = np.zeros((2, LANES), np.float32)
    for p in range(npb):
        for c in range(2):
            off = (2 * p + c) * stride
            lane_tpl[c, off:off + W] = 1.0
    wtab = jnp.einsum("ct,cl->tl",
                      weight.reshape(2, K * K).astype(jnp.float32),
                      jnp.asarray(lane_tpl))                    # (K*K, 128)

    in_bytes = Bt * C * H * W * x.dtype.itemsize
    out_bytes = Bt * H * W * x.dtype.itemsize
    # Double-buffered blocks + weight table + headroom; stay under v7x's 64 MiB
    # physical VMEM, allow >16 MiB on v5e/v6e when blocks grow.
    vmem_limit = int(min(48 << 20,
                         max(16 << 20,
                             4 * (in_bytes + out_bytes)
                             + K * K * LANES * 4 + (1 << 20))))

    kernel = functools.partial(_spatial_attention_kernel, npb=npb, stride=stride)
    out = pl.pallas_call(
        kernel,
        out_shape=jax.ShapeDtypeStruct((B_pad, 1, H, W), x.dtype),
        grid=(n_steps,),
        in_specs=[
            pl.BlockSpec((Bt, C, H, W), lambda b: (b, 0, 0, 0)),
            pl.BlockSpec((K * K, LANES), lambda b: (0, 0)),
        ],
        out_specs=pl.BlockSpec((Bt, 1, H, W), lambda b: (b, 0, 0, 0)),
        compiler_params=pltpu.CompilerParams(
            dimension_semantics=("parallel",),
            vmem_limit_bytes=vmem_limit),
    )(x, wtab)
    return out[:B] if B_pad != B else out


def _reference(x, weight):
    avg = jnp.mean(x, axis=1, keepdims=True)
    mx = jnp.max(x, axis=1, keepdims=True)
    feat = jnp.concatenate([avg, mx], axis=1)
    y = jax.lax.conv_general_dilated(
        feat, weight, window_strides=(1, 1),
        padding=((PAD, PAD), (PAD, PAD)),
        dimension_numbers=("NCHW", "OIHW", "NCHW"))
    return jax.nn.sigmoid(y)


if __name__ == "__main__":
    key = jax.random.PRNGKey(0)
    kx, kw = jax.random.split(key)

    B, C, H, W = 2, 4, 16, 16
    x = jax.random.normal(kx, (B, C, H, W), dtype=jnp.float32)
    # Synthetic conv weight (shape of nn.Conv2d(2, 1, 7, bias=False).weight).
    weight = 0.1 * jax.random.normal(kw, (1, 2, K, K), dtype=jnp.float32)

    out = jax.block_until_ready(spatial_attention(x, weight))
    ref = jax.block_until_ready(_reference(x, weight))

    assert out.shape == (B, 1, H, W)
    np.testing.assert_allclose(np.asarray(out), np.asarray(ref),
                               atol=1e-5, rtol=1e-5)
    print("KERNEL_OK")
</pallas_src>

<mosaic_0001>
module attributes {stable_mosaic.version = 11 : i64} {
  func.func @_spatial_attention_kernel(%arg0: i32, %arg1: memref<1x4x16x16xf32, #tpu.memory_space<vmem>>, %arg2: memref<49x128xf32, #tpu.memory_space<vmem>>, %arg3: memref<1x1x16x16xf32, #tpu.memory_space<vmem>>) attributes {dimension_semantics = [#tpu.dimension_semantics<parallel>], iteration_bounds = array<i64: 2>, scalar_prefetch = 0 : i64, scratch_operands = 0 : i64, tpu.core_type = #tpu.core_type<tc>, window_params = [{transform_indices = @transform_0, window_bounds = array<i64: 1, 4, 16, 16>}, {pipeline_mode = #tpu.pipeline_mode<synchronous>, transform_indices = @transform_1, window_bounds = array<i64: 49, 128>}, {transform_indices = @transform_2, window_bounds = array<i64: 1, 1, 16, 16>}]} {
    %cst = arith.constant 0.000000e+00 : f32
    %0 = vector.broadcast %cst : f32 to vector<1x16x16xf32>
    %cst_0 = arith.constant 0xFF800000 : f32
    %1 = vector.broadcast %cst_0 : f32 to vector<1x16x16xf32>
    %c0 = arith.constant 0 : index
    %c0_1 = arith.constant 0 : index
    %c0_2 = arith.constant 0 : index
    %c0_3 = arith.constant 0 : index
    %2 = vector.load %arg1[%c0, %c0_1, %c0_2, %c0_3] : memref<1x4x16x16xf32, #tpu.memory_space<vmem>>, vector<1x4x16x16xf32>
    %cst_4 = arith.constant dense<0.000000e+00> : vector<1x16x16xf32>
    %3 = vector.multi_reduction <add>, %2, %cst_4 [1] : vector<1x4x16x16xf32> to vector<1x16x16xf32>
    %4 = arith.addf %0, %3 : vector<1x16x16xf32>
    %cst_5 = arith.constant dense<0xFF800000> : vector<1x16x16xf32>
    %5 = vector.multi_reduction <maximumf>, %2, %cst_5 [1] : vector<1x4x16x16xf32> to vector<1x16x16xf32>
    %6 = arith.maximumf %1, %5 : vector<1x16x16xf32>
    %cst_6 = arith.constant 2.500000e-01 : f32
    %7 = vector.broadcast %cst_6 : f32 to vector<1x16x16xf32>
    %8 = arith.mulf %4, %7 : vector<1x16x16xf32>
    %9 = vector.shape_cast %8 : vector<1x16x16xf32> to vector<16x16xf32>
    %cst_7 = arith.constant 0.000000e+00 : f32
    %10 = vector.broadcast %cst_7 : f32 to vector<16x8xf32>
    %11 = vector.shape_cast %6 : vector<1x16x16xf32> to vector<16x16xf32>
    %cst_8 = arith.constant 0.000000e+00 : f32
    %12 = vector.broadcast %cst_8 : f32 to vector<16x88xf32>
    %13 = tpu.concatenate %9, %10, %11, %12 in 1 : vector<16x16xf32>, vector<16x8xf32>, vector<16x16xf32>, vector<16x88xf32> -> vector<16x128xf32>
    %cst_9 = arith.constant 0.000000e+00 : f32
    %14 = vector.broadcast %cst_9 : f32 to vector<3x128xf32>
    %15 = tpu.concatenate %14, %13, %14 in 0 : vector<3x128xf32>, vector<16x128xf32>, vector<3x128xf32> -> vector<22x128xf32>
    %cst_10 = arith.constant 0.000000e+00 : f32
    %16 = vector.broadcast %cst_10 : f32 to vector<22x128xf32>
    %cst_11 = arith.constant 0.000000e+00 : f32
    %17 = vector.broadcast %cst_11 : f32 to vector<22x128xf32>
    %cst_12 = arith.constant 0.000000e+00 : f32
    %18 = vector.broadcast %cst_12 : f32 to vector<22x128xf32>
    %cst_13 = arith.constant 0.000000e+00 : f32
    %19 = vector.broadcast %cst_13 : f32 to vector<22x128xf32>
    %cst_14 = arith.constant 0.000000e+00 : f32
    %20 = vector.broadcast %cst_14 : f32 to vector<22x128xf32>
    %cst_15 = arith.constant 0.000000e+00 : f32
    %21 = vector.broadcast %cst_15 : f32 to vector<22x128xf32>
    %cst_16 = arith.constant 0.000000e+00 : f32
    %22 = vector.broadcast %cst_16 : f32 to vector<22x128xf32>
    %23 = vector.extract_strided_slice %15 {offsets = [0, 125], sizes = [22, 3], strides = [1, 1]} : vector<22x128xf32> to vector<22x3xf32>
    %24 = vector.extract_strided_slice %15 {offsets = [0, 0], sizes = [22, 125], strides = [1, 1]} : vector<22x128xf32> to vector<22x125xf32>
    %25 = tpu.concatenate %23, %24 in 1 : vector<22x3xf32>, vector<22x125xf32> -> vector<22x128xf32>
    %c0_17 = arith.constant 0 : index
    %c0_18 = arith.constant 0 : index
    %26 = vector.load %arg2[%c0_17, %c0_18] : memref<49x128xf32, #tpu.memory_space<vmem>>, vector<1x128xf32>
    %27 = vector.broadcast %26 : vector<1x128xf32> to vector<22x128xf32>
    %28 = arith.mulf %25, %27 : vector<22x128xf32>
    %29 = arith.addf %16, %28 : vector<22x128xf32>
    %c7 = arith.constant 7 : index
    %c0_19 = arith.constant 0 : index
    %30 = vector.load %arg2[%c7, %c0_19] : memref<49x128xf32, #tpu.memory_space<vmem>>, vector<1x128xf32>
    %31 = vector.broadcast %30 : vector<1x128xf32> to vector<22x128xf32>
    %32 = arith.mulf %25, %31 : vector<22x128xf32>
    %33 = arith.addf %17, %32 : vector<22x128xf32>
    %c14 = arith.constant 14 : index
    %c0_20 = arith.constant 0 : index
    %34 = vector.load %arg2[%c14, %c0_20] : memref<49x128xf32, #tpu.memory_space<vmem>>, vector<1x128xf32>
    %35 = vector.broadcast %34 : vector<1x128xf32> to vector<22x128xf32>
    %36 = arith.mulf %25, %35 : vector<22x128xf32>
    %37 = arith.addf %18, %36 : vector<22x128xf32>
    %c21 = arith.constant 21 : index
    %c0_21 = arith.constant 0 : index
    %38 = vector.load %arg2[%c21, %c0_21] : memref<49x128xf32, #tpu.memory_space<vmem>>, vector<1x128xf32>
    %39 = vector.broadcast %38 : vector<1x128xf32> to vector<22x128xf32>
    %40 = arith.mulf %25, %39 : vector<22x128xf32>
    %41 = arith.addf %19, %40 : vector<22x128xf32>
    %c28 = arith.constant 28 : index
    %c0_22 = arith.constant 0 : index
    %42 = vector.load %arg2[%c28, %c0_22] : memref<49x128xf32, #tpu.memory_space<vmem>>, vector<1x128xf32>
    %43 = vector.broadcast %42 : vector<1x128xf32> to vector<22x128xf32>
    %44 = arith.mulf %25, %43 : vector<22x128xf32>
    %45 = arith.addf %20, %44 : vector<22x128xf32>
    %c35 = arith.constant 35 : index
    %c0_23 = arith.constant 0 : index
    %46 = vector.load %arg2[%c35, %c0_23] : memref<49x128xf32, #tpu.memory_space<vmem>>, vector<1x128xf32>
    %47 = vector.broadcast %46 : vector<1x128xf32> to vector<22x128xf32>
    %48 = arith.mulf %25, %47 : vector<22x128xf32>
    %49 = arith.addf %21, %48 : vector<22x128xf32>
    %c42 = arith.constant 42 : index
    %c0_24 = arith.constant 0 : index
    %50 = vector.load %arg2[%c42, %c0_24] : memref<49x128xf32, #tpu.memory_space<vmem>>, vector<1x128xf32>
    %51 = vector.broadcast %50 : vector<1x128xf32> to vector<22x128xf32>
    %52 = arith.mulf %25, %51 : vector<22x128xf32>
    %53 = arith.addf %22, %52 : vector<22x128xf32>
    %54 = vector.extract_strided_slice %15 {offsets = [0, 126], sizes = [22, 2], strides = [1, 1]} : vector<22x128xf32> to vector<22x2xf32>
    %55 = vector.extract_strided_slice %15 {offsets = [0, 0], sizes = [22, 126], strides = [1, 1]} : vector<22x128xf32> to vector<22x126xf32>
    %56 = tpu.concatenate %54, %55 in 1 : vector<22x2xf32>, vector<22x126xf32> -> vector<22x128xf32>
    %c1 = arith.constant 1 : index
    %c0_25 = arith.constant 0 : index
    %57 = vector.load %arg2[%c1, %c0_25] : memref<49x128xf32, #tpu.memory_space<vmem>>, vector<1x128xf32>
    %58 = vector.broadcast %57 : vector<1x128xf32> to vector<22x128xf32>
    %59 = arith.mulf %56, %58 : vector<22x128xf32>
    %60 = arith.addf %29, %59 : vector<22x128xf32>
    %c8 = arith.constant 8 : index
    %c0_26 = arith.constant 0 : index
    %61 = vector.load %arg2[%c8, %c0_26] : memref<49x128xf32, #tpu.memory_space<vmem>>, vector<1x128xf32>
    %62 = vector.broadcast %61 : vector<1x128xf32> to vector<22x128xf32>
    %63 = arith.mulf %56, %62 : vector<22x128xf32>
    %64 = arith.addf %33, %63 : vector<22x128xf32>
    %c15 = arith.constant 15 : index
    %c0_27 = arith.constant 0 : index
    %65 = vector.load %arg2[%c15, %c0_27] : memref<49x128xf32, #tpu.memory_space<vmem>>, vector<1x128xf32>
    %66 = vector.broadcast %65 : vector<1x128xf32> to vector<22x128xf32>
    %67 = arith.mulf %56, %66 : vector<22x128xf32>
    %68 = arith.addf %37, %67 : vector<22x128xf32>
    %c22 = arith.constant 22 : index
    %c0_28 = arith.constant 0 : index
    %69 = vector.load %arg2[%c22, %c0_28] : memref<49x128xf32, #tpu.memory_space<vmem>>, vector<1x128xf32>
    %70 = vector.broadcast %69 : vector<1x128xf32> to vector<22x128xf32>
    %71 = arith.mulf %56, %70 : vector<22x128xf32>
    %72 = arith.addf %41, %71 : vector<22x128xf32>
    %c29 = arith.constant 29 : index
    %c0_29 = arith.constant 0 : index
    %73 = vector.load %arg2[%c29, %c0_29] : memref<49x128xf32, #tpu.memory_space<vmem>>, vector<1x128xf32>
    %74 = vector.broadcast %73 : vector<1x128xf32> to vector<22x128xf32>
    %75 = arith.mulf %56, %74 : vector<22x128xf32>
    %76 = arith.addf %45, %75 : vector<22x128xf32>
    %c36 = arith.constant 36 : index
    %c0_30 = arith.constant 0 : index
    %77 = vector.load %arg2[%c36, %c0_30] : memref<49x128xf32, #tpu.memory_space<vmem>>, vector<1x128xf32>
    %78 = vector.broadcast %77 : vector<1x128xf32> to vector<22x128xf32>
    %79 = arith.mulf %56, %78 : vector<22x128xf32>
    %80 = arith.addf %49, %79 : vector<22x128xf32>
    %c43 = arith.constant 43 : index
    %c0_31 = arith.constant 0 : index
    %81 = vector.load %arg2[%c43, %c0_31] : memref<49x128xf32, #tpu.memory_space<vmem>>, vector<1x128xf32>
    %82 = vector.broadcast %81 : vector<1x128xf32> to vector<22x128xf32>
    %83 = arith.mulf %56, %82 : vector<22x128xf32>
    %84 = arith.addf %53, %83 : vector<22x128xf32>
    %85 = vector.extract_strided_slice %15 {offsets = [0, 127], sizes = [22, 1], strides = [1, 1]} : vector<22x128xf32> to vector<22x1xf32>
    %86 = vector.extract_strided_slice %15 {offsets = [0, 0], sizes = [22, 127], strides = [1, 1]} : vector<22x128xf32> to vector<22x127xf32>
    %87 = tpu.concatenate %85, %86 in 1 : vector<22x1xf32>, vector<22x127xf32> -> vector<22x128xf32>
    %c2 = arith.constant 2 : index
    %c0_32 = arith.constant 0 : index
    %88 = vector.load %arg2[%c2, %c0_32] : memref<49x128xf32, #tpu.memory_space<vmem>>, vector<1x128xf32>
    %89 = vector.broadcast %88 : vector<1x128xf32> to vector<22x128xf32>
    %90 = arith.mulf %87, %89 : vector<22x128xf32>
    %91 = arith.addf %60, %90 : vector<22x128xf32>
    %c9 = arith.constant 9 : index
    %c0_33 = arith.constant 0 : index
    %92 = vector.load %arg2[%c9, %c0_33] : memref<49x128xf32, #tpu.memory_space<vmem>>, vector<1x128xf32>
    %93 = vector.broadcast %92 : vector<1x128xf32> to vector<22x128xf32>
    %94 = arith.mulf %87, %93 : vector<22x128xf32>
    %95 = arith.addf %64, %94 : vector<22x128xf32>
    %c16 = arith.constant 16 : index
    %c0_34 = arith.constant 0 : index
    %96 = vector.load %arg2[%c16, %c0_34] : memref<49x128xf32, #tpu.memory_space<vmem>>, vector<1x128xf32>
    %97 = vector.broadcast %96 : vector<1x128xf32> to vector<22x128xf32>
    %98 = arith.mulf %87, %97 : vector<22x128xf32>
    %99 = arith.addf %68, %98 : vector<22x128xf32>
    %c23 = arith.constant 23 : index
    %c0_35 = arith.constant 0 : index
    %100 = vector.load %arg2[%c23, %c0_35] : memref<49x128xf32, #tpu.memory_space<vmem>>, vector<1x128xf32>
    %101 = vector.broadcast %100 : vector<1x128xf32> to vector<22x128xf32>
    %102 = arith.mulf %87, %101 : vector<22x128xf32>
    %103 = arith.addf %72, %102 : vector<22x128xf32>
    %c30 = arith.constant 30 : index
    %c0_36 = arith.constant 0 : index
    %104 = vector.load %arg2[%c30, %c0_36] : memref<49x128xf32, #tpu.memory_space<vmem>>, vector<1x128xf32>
    %105 = vector.broadcast %104 : vector<1x128xf32> to vector<22x128xf32>
    %106 = arith.mulf %87, %105 : vector<22x128xf32>
    %107 = arith.addf %76, %106 : vector<22x128xf32>
    %c37 = arith.constant 37 : index
    %c0_37 = arith.constant 0 : index
    %108 = vector.load %arg2[%c37, %c0_37] : memref<49x128xf32, #tpu.memory_space<vmem>>, vector<1x128xf32>
    %109 = vector.broadcast %108 : vector<1x128xf32> to vector<22x128xf32>
    %110 = arith.mulf %87, %109 : vector<22x128xf32>
    %111 = arith.addf %80, %110 : vector<22x128xf32>
    %c44 = arith.constant 44 : index
    %c0_38 = arith.constant 0 : index
    %112 = vector.load %arg2[%c44, %c0_38] : memref<49x128xf32, #tpu.memory_space<vmem>>, vector<1x128xf32>
    %113 = vector.broadcast %112 : vector<1x128xf32> to vector<22x128xf32>
    %114 = arith.mulf %87, %113 : vector<22x128xf32>
    %115 = arith.addf %84, %114 : vector<22x128xf32>
    %c3 = arith.constant 3 : index
    %c0_39 = arith.constant 0 : index
    %116 = vector.load %arg2[%c3, %c0_39] : memref<49x128xf32, #tpu.memory_space<vmem>>, vector<1x128xf32>
    %117 = vector.broadcast %116 : vector<1x128xf32> to vector<22x128xf32>
    %118 = arith.mulf %15, %117 : vector<22x128xf32>
    %119 = arith.addf %91, %118 : vector<22x128xf32>
    %c10 = arith.constant 10 : index
    %c0_40 = arith.constant 0 : index
    %120 = vector.load %arg2[%c10, %c0_40] : memref<49x128xf32, #tpu.memory_space<vmem>>, vector<1x128xf32>
    %121 = vector.broadcast %120 : vector<1x128xf32> to vector<22x128xf32>
    %122 = arith.mulf %15, %121 : vector<22x128xf32>
    %123 = arith.addf %95, %122 : vector<22x128xf32>
    %c17 = arith.constant 17 : index
    %c0_41 = arith.constant 0 : index
    %124 = vector.load %arg2[%c17, %c0_41] : memref<49x128xf32, #tpu.memory_space<vmem>>, vector<1x128xf32>
    %125 = vector.broadcast %124 : vector<1x128xf32> to vector<22x128xf32>
    %126 = arith.mulf %15, %125 : vector<22x128xf32>
    %127 = arith.addf %99, %126 : vector<22x128xf32>
    %c24 = arith.constant 24 : index
    %c0_42 = arith.constant 0 : index
    %128 = vector.load %arg2[%c24, %c0_42] : memref<49x128xf32, #tpu.memory_space<vmem>>, vector<1x128xf32>
    %129 = vector.broadcast %128 : vector<1x128xf32> to vector<22x128xf32>
    %130 = arith.mulf %15, %129 : vector<22x128xf32>
    %131 = arith.addf %103, %130 : vector<22x128xf32>
    %c31 = arith.constant 31 : index
    %c0_43 = arith.constant 0 : index
    %132 = vector.load %arg2[%c31, %c0_43] : memref<49x128xf32, #tpu.memory_space<vmem>>, vector<1x128xf32>
    %133 = vector.broadcast %132 : vector<1x128xf32> to vector<22x128xf32>
    %134 = arith.mulf %15, %133 : vector<22x128xf32>
    %135 = arith.addf %107, %134 : vector<22x128xf32>
    %c38 = arith.constant 38 : index
    %c0_44 = arith.constant 0 : index
    %136 = vector.load %arg2[%c38, %c0_44] : memref<49x128xf32, #tpu.memory_space<vmem>>, vector<1x128xf32>
    %137 = vector.broadcast %136 : vector<1x128xf32> to vector<22x128xf32>
    %138 = arith.mulf %15, %137 : vector<22x128xf32>
    %139 = arith.addf %111, %138 : vector<22x128xf32>
    %c45 = arith.constant 45 : index
    %c0_45 = arith.constant 0 : index
    %140 = vector.load %arg2[%c45, %c0_45] : memref<49x128xf32, #tpu.memory_space<vmem>>, vector<1x128xf32>
    %141 = vector.broadcast %140 : vector<1x128xf32> to vector<22x128xf32>
    %142 = arith.mulf %15, %141 : vector<22x128xf32>
    %143 = arith.addf %115, %142 : vector<22x128xf32>
    %144 = vector.extract_strided_slice %15 {offsets = [0, 1], sizes = [22, 127], strides = [1, 1]} : vector<22x128xf32> to vector<22x127xf32>
    %145 = vector.extract_strided_slice %15 {offsets = [0, 0], sizes = [22, 1], strides = [1, 1]} : vector<22x128xf32> to vector<22x1xf32>
    %146 = tpu.concatenate %144, %145 in 1 : vector<22x127xf32>, vector<22x1xf32> -> vector<22x128xf32>
    %c4 = arith.constant 4 : index
    %c0_46 = arith.constant 0 : index
    %147 = vector.load %arg2[%c4, %c0_46] : memref<49x128xf32, #tpu.memory_space<vmem>>, vector<1x128xf32>
    %148 = vector.broadcast %147 : vector<1x128xf32> to vector<22x128xf32>
    %149 = arith.mulf %146, %148 : vector<22x128xf32>
    %150 = arith.addf %119, %149 : vector<22x128xf32>
    %c11 = arith.constant 11 : index
    %c0_47 = arith.constant 0 : index
    %151 = vector.load %arg2[%c11, %c0_47] : memref<49x128xf32, #tpu.memory_space<vmem>>, vector<1x128xf32>
    %152 = vector.broadcast %151 : vector<1x128xf32> to vector<22x128xf32>
    %153 = arith.mulf %146, %152 : vector<22x128xf32>
    %154 = arith.addf %123, %153 : vector<22x128xf32>
    %c18 = arith.constant 18 : index
    %c0_48 = arith.constant 0 : index
    %155 = vector.load %arg2[%c18, %c0_48] : memref<49x128xf32, #tpu.memory_space<vmem>>, vector<1x128xf32>
    %156 = vector.broadcast %155 : vector<1x128xf32> to vector<22x128xf32>
    %157 = arith.mulf %146, %156 : vector<22x128xf32>
    %158 = arith.addf %127, %157 : vector<22x128xf32>
    %c25 = arith.constant 25 : index
    %c0_49 = arith.constant 0 : index
    %159 = vector.load %arg2[%c25, %c0_49] : memref<49x128xf32, #tpu.memory_space<vmem>>, vector<1x128xf32>
    %160 = vector.broadcast %159 : vector<1x128xf32> to vector<22x128xf32>
    %161 = arith.mulf %146, %160 : vector<22x128xf32>
    %162 = arith.addf %131, %161 : vector<22x128xf32>
    %c32 = arith.constant 32 : index
    %c0_50 = arith.constant 0 : index
    %163 = vector.load %arg2[%c32, %c0_50] : memref<49x128xf32, #tpu.memory_space<vmem>>, vector<1x128xf32>
    %164 = vector.broadcast %163 : vector<1x128xf32> to vector<22x128xf32>
    %165 = arith.mulf %146, %164 : vector<22x128xf32>
    %166 = arith.addf %135, %165 : vector<22x128xf32>
    %c39 = arith.constant 39 : index
    %c0_51 = arith.constant 0 : index
    %167 = vector.load %arg2[%c39, %c0_51] : memref<49x128xf32, #tpu.memory_space<vmem>>, vector<1x128xf32>
    %168 = vector.broadcast %167 : vector<1x128xf32> to vector<22x128xf32>
    %169 = arith.mulf %146, %168 : vector<22x128xf32>
    %170 = arith.addf %139, %169 : vector<22x128xf32>
    %c46 = arith.constant 46 : index
    %c0_52 = arith.constant 0 : index
    %171 = vector.load %arg2[%c46, %c0_52] : memref<49x128xf32, #tpu.memory_space<vmem>>, vector<1x128xf32>
    %172 = vector.broadcast %171 : vector<1x128xf32> to vector<22x128xf32>
    %173 = arith.mulf %146, %172 : vector<22x128xf32>
    %174 = arith.addf %143, %173 : vector<22x128xf32>
    %175 = vector.extract_strided_slice %15 {offsets = [0, 2], sizes = [22, 126], strides = [1, 1]} : vector<22x128xf32> to vector<22x126xf32>
    %176 = vector.extract_strided_slice %15 {offsets = [0, 0], sizes = [22, 2], strides = [1, 1]} : vector<22x128xf32> to vector<22x2xf32>
    %177 = tpu.concatenate %175, %176 in 1 : vector<22x126xf32>, vector<22x2xf32> -> vector<22x128xf32>
    %c5 = arith.constant 5 : index
    %c0_53 = arith.constant 0 : index
    %178 = vector.load %arg2[%c5, %c0_53] : memref<49x128xf32, #tpu.memory_space<vmem>>, vector<1x128xf32>
    %179 = vector.broadcast %178 : vector<1x128xf32> to vector<22x128xf32>
    %180 = arith.mulf %177, %179 : vector<22x128xf32>
    %181 = arith.addf %150, %180 : vector<22x128xf32>
    %c12 = arith.constant 12 : index
    %c0_54 = arith.constant 0 : index
    %182 = vector.load %arg2[%c12, %c0_54] : memref<49x128xf32, #tpu.memory_space<vmem>>, vector<1x128xf32>
    %183 = vector.broadcast %182 : vector<1x128xf32> to vector<22x128xf32>
    %184 = arith.mulf %177, %183 : vector<22x128xf32>
    %185 = arith.addf %154, %184 : vector<22x128xf32>
    %c19 = arith.constant 19 : index
    %c0_55 = arith.constant 0 : index
    %186 = vector.load %arg2[%c19, %c0_55] : memref<49x128xf32, #tpu.memory_space<vmem>>, vector<1x128xf32>
    %187 = vector.broadcast %186 : vector<1x128xf32> to vector<22x128xf32>
    %188 = arith.mulf %177, %187 : vector<22x128xf32>
    %189 = arith.addf %158, %188 : vector<22x128xf32>
    %c26 = arith.constant 26 : index
    %c0_56 = arith.constant 0 : index
    %190 = vector.load %arg2[%c26, %c0_56] : memref<49x128xf32, #tpu.memory_space<vmem>>, vector<1x128xf32>
    %191 = vector.broadcast %190 : vector<1x128xf32> to vector<22x128xf32>
    %192 = arith.mulf %177, %191 : vector<22x128xf32>
    %193 = arith.addf %162, %192 : vector<22x128xf32>
    %c33 = arith.constant 33 : index
    %c0_57 = arith.constant 0 : index
    %194 = vector.load %arg2[%c33, %c0_57] : memref<49x128xf32, #tpu.memory_space<vmem>>, vector<1x128xf32>
    %195 = vector.broadcast %194 : vector<1x128xf32> to vector<22x128xf32>
    %196 = arith.mulf %177, %195 : vector<22x128xf32>
    %197 = arith.addf %166, %196 : vector<22x128xf32>
    %c40 = arith.constant 40 : index
    %c0_58 = arith.constant 0 : index
    %198 = vector.load %arg2[%c40, %c0_58] : memref<49x128xf32, #tpu.memory_space<vmem>>, vector<1x128xf32>
    %199 = vector.broadcast %198 : vector<1x128xf32> to vector<22x128xf32>
    %200 = arith.mulf %177, %199 : vector<22x128xf32>
    %201 = arith.addf %170, %200 : vector<22x128xf32>
    %c47 = arith.constant 47 : index
    %c0_59 = arith.constant 0 : index
    %202 = vector.load %arg2[%c47, %c0_59] : memref<49x128xf32, #tpu.memory_space<vmem>>, vector<1x128xf32>
    %203 = vector.broadcast %202 : vector<1x128xf32> to vector<22x128xf32>
    %204 = arith.mulf %177, %203 : vector<22x128xf32>
    %205 = arith.addf %174, %204 : vector<22x128xf32>
    %206 = vector.extract_strided_slice %15 {offsets = [0, 3], sizes = [22, 125], strides = [1, 1]} : vector<22x128xf32> to vector<22x125xf32>
    %207 = vector.extract_strided_slice %15 {offsets = [0, 0], sizes = [22, 3], strides = [1, 1]} : vector<22x128xf32> to vector<22x3xf32>
    %208 = tpu.concatenate %206, %207 in 1 : vector<22x125xf32>, vector<22x3xf32> -> vector<22x128xf32>
    %c6 = arith.constant 6 : index
    %c0_60 = arith.constant 0 : index
    %209 = vector.load %arg2[%c6, %c0_60] : memref<49x128xf32, #tpu.memory_space<vmem>>, vector<1x128xf32>
    %210 = vector.broadcast %209 : vector<1x128xf32> to vector<22x128xf32>
    %211 = arith.mulf %208, %210 : vector<22x128xf32>
    %212 = arith.addf %181, %211 : vector<22x128xf32>
    %c13 = arith.constant 13 : index
    %c0_61 = arith.constant 0 : index
    %213 = vector.load %arg2[%c13, %c0_61] : memref<49x128xf32, #tpu.memory_space<vmem>>, vector<1x128xf32>
    %214 = vector.broadcast %213 : vector<1x128xf32> to vector<22x128xf32>
    %215 = arith.mulf %208, %214 : vector<22x128xf32>
    %216 = arith.addf %185, %215 : vector<22x128xf32>
    %c20 = arith.constant 20 : index
    %c0_62 = arith.constant 0 : index
    %217 = vector.load %arg2[%c20, %c0_62] : memref<49x128xf32, #tpu.memory_space<vmem>>, vector<1x128xf32>
    %218 = vector.broadcast %217 : vector<1x128xf32> to vector<22x128xf32>
    %219 = arith.mulf %208, %218 : vector<22x128xf32>
    %220 = arith.addf %189, %219 : vector<22x128xf32>
    %c27 = arith.constant 27 : index
    %c0_63 = arith.constant 0 : index
    %221 = vector.load %arg2[%c27, %c0_63] : memref<49x128xf32, #tpu.memory_space<vmem>>, vector<1x128xf32>
    %222 = vector.broadcast %221 : vector<1x128xf32> to vector<22x128xf32>
    %223 = arith.mulf %208, %222 : vector<22x128xf32>
    %224 = arith.addf %193, %223 : vector<22x128xf32>
    %c34 = arith.constant 34 : index
    %c0_64 = arith.constant 0 : index
    %225 = vector.load %arg2[%c34, %c0_64] : memref<49x128xf32, #tpu.memory_space<vmem>>, vector<1x128xf32>
    %226 = vector.broadcast %225 : vector<1x128xf32> to vector<22x128xf32>
    %227 = arith.mulf %208, %226 : vector<22x128xf32>
    %228 = arith.addf %197, %227 : vector<22x128xf32>
    %c41 = arith.constant 41 : index
    %c0_65 = arith.constant 0 : index
    %229 = vector.load %arg2[%c41, %c0_65] : memref<49x128xf32, #tpu.memory_space<vmem>>, vector<1x128xf32>
    %230 = vector.broadcast %229 : vector<1x128xf32> to vector<22x128xf32>
    %231 = arith.mulf %208, %230 : vector<22x128xf32>
    %232 = arith.addf %201, %231 : vector<22x128xf32>
    %c48 = arith.constant 48 : index
    %c0_66 = arith.constant 0 : index
    %233 = vector.load %arg2[%c48, %c0_66] : memref<49x128xf32, #tpu.memory_space<vmem>>, vector<1x128xf32>
    %234 = vector.broadcast %233 : vector<1x128xf32> to vector<22x128xf32>
    %235 = arith.mulf %208, %234 : vector<22x128xf32>
    %236 = arith.addf %205, %235 : vector<22x128xf32>
    %237 = vector.extract_strided_slice %212 {offsets = [0, 0], sizes = [16, 128], strides = [1, 1]} : vector<22x128xf32> to vector<16x128xf32>
    %238 = vector.extract_strided_slice %216 {offsets = [1, 0], sizes = [16, 128], strides = [1, 1]} : vector<22x128xf32> to vector<16x128xf32>
    %239 = arith.addf %237, %238 : vector<16x128xf32>
    %240 = vector.extract_strided_slice %220 {offsets = [2, 0], sizes = [16, 128], strides = [1, 1]} : vector<22x128xf32> to vector<16x128xf32>
    %241 = arith.addf %239, %240 : vector<16x128xf32>
    %242 = vector.extract_strided_slice %224 {offsets = [3, 0], sizes = [16, 128], strides = [1, 1]} : vector<22x128xf32> to vector<16x128xf32>
    %243 = arith.addf %241, %242 : vector<16x128xf32>
    %244 = vector.extract_strided_slice %228 {offsets = [4, 0], sizes = [16, 128], strides = [1, 1]} : vector<22x128xf32> to vector<16x128xf32>
    %245 = arith.addf %243, %244 : vector<16x128xf32>
    %246 = vector.extract_strided_slice %232 {offsets = [5, 0], sizes = [16, 128], strides = [1, 1]} : vector<22x128xf32> to vector<16x128xf32>
    %247 = arith.addf %245, %246 : vector<16x128xf32>
    %248 = vector.extract_strided_slice %236 {offsets = [6, 0], sizes = [16, 128], strides = [1, 1]} : vector<22x128xf32> to vector<16x128xf32>
    %249 = arith.addf %247, %248 : vector<16x128xf32>
    %250 = vector.extract_strided_slice %249 {offsets = [0, 0], sizes = [16, 16], strides = [1, 1]} : vector<16x128xf32> to vector<16x16xf32>
    %251 = vector.extract_strided_slice %249 {offsets = [0, 24], sizes = [16, 16], strides = [1, 1]} : vector<16x128xf32> to vector<16x16xf32>
    %252 = arith.addf %250, %251 : vector<16x16xf32>
    %253 = arith.negf %252 : vector<16x16xf32>
    %254 = math.exp %253 : vector<16x16xf32>
    %cst_67 = arith.constant 1.000000e+00 : f32
    %255 = vector.broadcast %cst_67 : f32 to vector<16x16xf32>
    %256 = arith.addf %255, %254 : vector<16x16xf32>
    %257 = arith.divf %255, %256 : vector<16x16xf32>
    %c0_68 = arith.constant 0 : index
    %c0_69 = arith.constant 0 : index
    %c0_70 = arith.constant 0 : index
    %c0_71 = arith.constant 0 : index
    %258 = vector.load %arg3[%c0_68, %c0_69, %c0_70, %c0_71] : memref<1x1x16x16xf32, #tpu.memory_space<vmem>>, vector<1x1x16x16xf32>
    %259 = vector.shape_cast %258 : vector<1x1x16x16xf32> to vector<16x16xf32>
    %260 = vector.shape_cast %257 : vector<16x16xf32> to vector<1x1x16x16xf32>
    tpu.vector_store %arg3[%c0_68, %c0_69, %c0_70, %c0_71], %260 {strides = array<i32>} : memref<1x1x16x16xf32, #tpu.memory_space<vmem>>, vector<1x1x16x16xf32>,
    return
  }
  func.func @transform_0(%arg0: i32) -> (i32, i32, i32, i32) {
    %c0_i32 = arith.constant 0 : i32
    %c0_i32_0 = arith.constant 0 : i32
    %c0_i32_1 = arith.constant 0 : i32
    %c0_i32_2 = arith.constant 0 : i32
    return %arg0, %c0_i32, %c0_i32_0, %c0_i32_1 : i32, i32, i32, i32
  }
  func.func @transform_1(%arg0: i32) -> (i32, i32) {
    %c0_i32 = arith.constant 0 : i32
    %c0_i32_0 = arith.constant 0 : i32
    %c0_i32_1 = arith.constant 0 : i32
    return %c0_i32, %c0_i32_0 : i32, i32
  }
  func.func @transform_2(%arg0: i32) -> (i32, i32, i32, i32) {
    %c0_i32 = arith.constant 0 : i32
    %c0_i32_0 = arith.constant 0 : i32
    %c0_i32_1 = arith.constant 0 : i32
    %c0_i32_2 = arith.constant 0 : i32
    return %arg0, %c0_i32, %c0_i32_0, %c0_i32_1 : i32, i32, i32, i32
  }
}

</mosaic_0001>

<bundles_post_ra>
// kernel: tpu_custom_call.1
= control target key start
LH: loop header
LB: loop body
LE: loop exit
PB: predicated region body
PF: predicated region fallthrough
CT: control target
= control target key end

     0   :  { %7 = vsyncpa [#allocation3], 0  ;;  %s1837_s0 = inlined_call_operand.hbm [shape: f32[2,4,16,16], index: 0, kind: input, shape index: {}]   ;;  %s1838_s1 = inlined_call_operand.hbm [shape: f32[49,128], index: 1, kind: input, shape index: {}]   ;;  %s1839_s2 = inlined_call_operand.hbm [shape: f32[2,1,16,16], index: 2, kind: output, shape index: {}]  }
   0x1   :  { %9 = vsyncpa [#allocation3 + $0x1], 0 }
   0x2   :  { %10 = vsyncpa [#allocation6], 0 }
   0x3   :  { %11 = vsyncpa [#allocation4], 0 }
   0x4   :  { %13 = vsyncpa [#allocation4 + $0x1], 0  ;;  %s1330_s9 = smov 0   ;;  %s1332_s10 = smov 0  }
   0x5   :  { %s1334_s11 = smov 0   ;;  %s1336_s12 = smov 0  }
   0x6 LB: > { %s1351_s13 = sadd.s32 4294967295, %s1298_s12   ;;  %s1024_s14 = sadd.s32 4294967294, %s1298_s12   ;;  %s1298_s12 = sphi %s1336_s12, %s1881_s12   ;;  %s1294_s11 = sphi %s1334_s11, %s1880_s11   ;;  %s1290_s10 = sphi %s1332_s10, %s1879_s10   ;;  %s1286_s9 = sphi %s1330_s9, %s1878_s9  }
   0x7   : > { %p39_p0 = scmp.ne.s32.totalorder %s1290_s10, %s1286_s9  ;;  %p1840_p1 = scmp.eq.s32.totalorder %s1351_s13, 0 }
   0x8   : > { %p90_p3 = scmp.eq.s32.totalorder %s1024_s14, 1  ;;  %p1025_p5 = scmp.ge.s32.totalorder %s1298_s12, 1 }
   0x9   : > { %p1360_p4 = por %p1840_p1, %p39_p0  ;;  %p97_p7 = scmp.lt.s32.totalorder %s1298_s12, 3 }
   0xa   : > { %p1365_p6 = por %p90_p3, %p39_p0  ;;  %s1300_s18 = smov [#allocation5]  }
   0xb   : > { %s1843_s15 = scalar_select %p1360_p4, 1, 0 }
   0xc   : > { %s1844_s16 = scalar_select %p1365_p6, 1, 0 }
   0xd   : > { %p1370_p8 = pnand %p1025_p5, %p97_p7  ;;  %s109_s19 = sshll.u32 %s1300_s18, 4  ;;  %s1374_s19 = int_to_ptr.vmem [resolvable:$true] %s109_s19 }
   0xe   : > { %s1386_s21 = sadd.s32 1, %s1298_s12   ;;  %s26_s22 = sadd.s32 1, %s1294_s11 }
   0xf   : > { %s1845_s17 = scalar_select %p1370_p8, 1, 0 }
  0x10   : > { %p1101_p9 = pneg %p1370_p8  ;;  %s23_s23 = ssub.s32 %s1298_s12, %s1386_s21 }
  0x11   : > { %s1170_s26 = scalar_lea.hbm %s1838_s1, 896 }
  0x12   : > { %p1381_p11 = pnand %p1101_p9, %p1840_p1  ;;  %p1171_p12 = scmp.ne.s32.totalorder %s1838_s1, %s1170_s26 }
  0x13   : > { %p1177_p5 = scmp.lt.u32.totalorder %s1170_s26, %s1838_s1 }
  0x14   : > { %p1172_p13 = pneg %p1381_p11 }
  0x16   : > { %p1173_p0 = pnand %p1172_p13, %p1171_p12 }
  0x18   : > { %p1174_p3 = pneg %p1173_p0 }
  0x1a   : > { %p1179_p7 = pnand %p1177_p5, %p1174_p3 }
  0x1c   : > { %1182 = shalt.err (!%p1179_p7)
}
  0x1d   : > { %s1183_s3 = scalar_lea.vmem %s1374_s19, 896  ;;  %p1191_p2 = scmp.lt.s32.totalorder %s1374_s19, %s1374_s19 }
  0x1e   : > { %p1184_p9 = scmp.ne.s32.totalorder %s1374_s19, %s1183_s3  ;;  %p1192_p6 = scmp.lt.s32.totalorder %s1183_s3, %s1183_s3 }
  0x20   : > { %p1186_p10 = pnand %p1184_p9, %p1172_p13  ;;  %p1193_p4 = por %p1192_p6, %p1191_p2 }
  0x22   : > { %p1187_p1 = pneg %p1186_p10 }
  0x24   : > { %p1194_p8 = pnand %p1193_p4, %p1187_p1 }
  0x26   : > { %1197 = shalt.err (!%p1194_p8)
}
  0x27   : > { %s1301_s4 = smov 128   ;;  %s1302_s5 = smov 8  }
  0x28   : > { %1104 = dma.hbm_to_vmem [thread:$0]  (!%p1381_p11), %s1838_s1, 896, %s1374_s19, [#allocation6], %s1301_s4, %s1301_s4, %s1302_s5  }
  0x29   : > { %p24_p1 = scmp.eq.s32.totalorder %s23_s23, 0  ;;  %p33_p2 = scmp.ne.s32.totalorder %s1294_s11, %s1290_s10 }
  0x2a   : > { %p34_p4 = scmp.eq.s32.totalorder %s1298_s12, 0  ;;  %p1114_p6 = scmp.lt.s32.totalorder %s1298_s12, 2 }
  0x2b   : > { %s1420_s8 = scalar_select %p24_p1, %s1294_s11, %s26_s22  }
  0x2c   : > { %p35_p8 = por %p34_p4, %p33_p2  ;;  %p1847_p10 = scmp.eq.s32.totalorder %s1351_s13, 1 }
  0x2d   : > { %s123_s18 = sand.u32 1, %s1294_s11   ;;  %s1091_s20 = sshll.u32 %s1298_s12, 10 }
  0x2e   : > { %p1424_p12 = por %p1847_p10, %p33_p2  ;;  %s1028_s24 = sshll.u32 %s123_s18, 6 }
  0x2f   : > { %s1433_s27 = scalar_lea.hbm %s1837_s0, %s1091_s20  ;;  %s127_s19 = scalar_lea.vmem [#allocation2], %s1028_s24 }
  0x30   : > { %s134_s22 = sshll.u32 %s127_s19, 4  ;;  %p1435_p11 = pnand %p1114_p6, %p35_p8  ;;  %s1439_s22 = int_to_ptr.vmem [resolvable:$true] %s134_s22 }
  0x31   : > { %s1441_s28 = scalar_lea.sflag [#allocation3], %s123_s18  ;;  %s1198_s29 = scalar_lea.hbm %s1433_s27, 1024 }
  0x32   : > { %p1199_p13 = scmp.ne.s32.totalorder %s1433_s27, %s1198_s29  ;;  %p1200_p0 = pneg %p1435_p11 }
  0x33   : > { %s1203_s6 = scalar_lea.hbm %s1837_s0, 2048  ;;  %p1204_p7 = scmp.lt.u32.totalorder %s1433_s27, %s1837_s0 }
  0x34   : > { %p1201_p3 = pnand %p1200_p0, %p1199_p13  ;;  %p1205_p9 = scmp.lt.u32.totalorder %s1203_s6, %s1198_s29 }
  0x35   : > { %p1207_p2 = scmp.lt.u32.totalorder %s1198_s29, %s1433_s27 }
  0x36   : > { %p1202_p5 = pneg %p1201_p3  ;;  %p1206_p1 = por %p1205_p9, %p1204_p7 }
  0x38   : > { %p1208_p4 = por %p1207_p2, %p1206_p1 }
  0x3a   : > { %p1209_p6 = pnand %p1208_p4, %p1202_p5 }
  0x3c   : > { %1212 = shalt.err (!%p1209_p6)
}
  0x3d   : > { %s1213_s18 = scalar_lea.vmem %s1439_s22, 1024  ;;  %s1303_s24 = smov [#allocation2]  }
  0x3e   : > { %p1214_p8 = scmp.ne.s32.totalorder %s1439_s22, %s1213_s18  ;;  %s1218_s25 = sshll.u32 %s1303_s24, 4  ;;  %s1219_s25 = int_to_ptr.vmem [resolvable:$false] %s1218_s25 }
  0x3f   : > { %s1220_s26 = scalar_lea.vmem %s1219_s25, 2048  ;;  %p1221_p3 = scmp.lt.s32.totalorder %s1439_s22, %s1219_s25 }
  0x40   : > { %p1216_p10 = pnand %p1214_p8, %p1200_p0  ;;  %p1222_p7 = scmp.lt.s32.totalorder %s1220_s26, %s1213_s18 }
  0x42   : > { %p1217_p13 = pneg %p1216_p10  ;;  %p1223_p9 = por %p1222_p7, %p1221_p3 }
  0x44   : > { %p1224_p1 = pnand %p1223_p9, %p1217_p13 }
  0x46   : > { %1227 = shalt.err (!%p1224_p1)
}
  0x47   : > { %1108 = dma.hbm_to_vmem [thread:$0]  (!%p1435_p11), %s1433_s27, 1024, %s1439_s22, %s1441_s28, %s1301_s4, %s1301_s4, %s1302_s5  }
  0x48   : > { %p1850_p0 = scmp.ne.s32.totalorder %s1845_s17, 0 }
  0x4a   : > { %146 = sbr.rel (%p1850_p0) target bundleno = 570 (0x23a), region = 28 }
  0x51   : > { %s1475_s19 = sand.u32 1, %s1290_s10   ;;  %p1851_p5 = scmp.ne.s32.totalorder %s1843_s15, 0 }
  0x52   : > { %s1032_s29 = sshll.u32 %s1475_s19, 6  ;;  %s149_s30 = scalar_lea.sflag [#allocation3], %s1475_s19 }
  0x53   : > { %s152_s3 = scalar_lea.vmem [#allocation2], %s1032_s29 }
  0x54   : > { %1273 = dma.done.wait (%p1851_p5), %s149_s30, 1024  }
  0x55   : > { %1275 = vsyncadd (%p1851_p5), %s149_s30, 4294966272  ;;  %p1852_p2 = scmp.eq.s32.totalorder %s1351_s13, 0 }
  0x57   : > { %1277 = dma.done.wait (%p1852_p2), [#allocation6], 896   ;;  %p1853_p11 = pmov %p1852_p2 }
  0x58   : > { %vm185_vm0 = vcmask 130048   ;;  %v177_v0 = vld [vmem:[%s152_s3] sm:$0xff]  ;;  %v179_v1 = vld [vmem:[%s152_s3 + $0x10] sm:$0xff]  ;;  %v178_v8 = vld [vmem:[%s152_s3 + $0x8] sm:$0xff]  ;;  %s1304_s15 = smov 24   ;;  %vm228_vm1 = vcmask 195584  }
  0x59   : > { %1279 = vsyncadd (%p1853_p11), [#allocation6], 4294966400  ;;  %v181_v2 = vld [vmem:[%s152_s3 + $0x20] sm:$0xff]  ;;  %v183_v3 = vld [vmem:[%s152_s3 + $0x30] sm:$0xff]  ;;  %v187_v4 = vsel %vm185_vm0, %v179_v1, 0.0  ;;  %v202_v6 = vsel %vm185_vm0, %v177_v0, -inf }
  0x5a   : > { %v189_v5 = vsel %vm185_vm0, %v181_v2, 0.0  ;;  %v203_v7 = vsel %vm185_vm0, %v179_v1, -inf  ;;  %v191_v9 = vsel %vm185_vm0, %v183_v3, 0.0  ;;  %v204_v10 = vsel %vm185_vm0, %v181_v2, -inf  ;;  %v180_v13 = vld [vmem:[%s152_s3 + $0x18] sm:$0xff]  ;;  %v182_v14 = vld [vmem:[%s152_s3 + $0x28] sm:$0xff] }
  0x5b   : > { %v206_v11 = vsel %vm185_vm0, %v183_v3, -inf  ;;  %v186_v12 = vsel %vm185_vm0, %v177_v0, 0.0  ;;  %v205_v15 = vmax.f32 %v202_v6, %v204_v10  ;;  %v184_v18 = vld [vmem:[%s152_s3 + $0x38] sm:$0xff]  ;;  %v193_v19 = vsel %vm185_vm0, %v178_v8, 0.0  ;;  %s1305_s17 = smov 3   ;;  %s1306_s4 = smov 2  }
  0x5c   : > { %v207_v16 = vmax.f32 %v203_v7, %v206_v11  ;;  %v188_v17 = vadd.f32 %v187_v4, %v186_v12  ;;  %v194_v20 = vsel %vm185_vm0, %v180_v13, 0.0  ;;  %v196_v21 = vsel %vm185_vm0, %v182_v14, 0.0  ;;  %s1307_s5 = smov 1   ;;  %s1308_s27 = smov 127   ;;  %v1057_v51 = vld [vmem:[#allocation5 + $0xa] ss:$0 sm:$0xff] }
  0x5d   : > { %v209_v22 = vsel %vm185_vm0, %v178_v8, -inf  ;;  %v210_v23 = vsel %vm185_vm0, %v180_v13, -inf  ;;  %v195_v26 = vadd.f32 %v194_v20, %v193_v19  ;;  %v211_v27 = vsel %vm185_vm0, %v182_v14, -inf  ;;  %s1309_s22 = smov 126   ;;  %s1310_s23 = smov 125  }
  0x5e   : > { %v208_v24 = vmax.f32 %v205_v15, %v207_v16  ;;  %v190_v25 = vadd.f32 %v189_v5, %v188_v17  ;;  %v212_v28 = vmax.f32 %v209_v22, %v211_v27  ;;  %v213_v29 = vsel %vm185_vm0, %v184_v18, -inf  ;;  %v1058_v52 = vld [vmem:[#allocation5 + $0x11] ss:$0 sm:$0xff]  ;;  %v1059_v53 = vld [vmem:[#allocation5 + $0x18] ss:$0 sm:$0xff]  ;;  %s1311_s28 = smov 104  }
  0x5f   : > { %v198_v30 = vsel %vm185_vm0, %v184_v18, 0.0  ;;  %v214_v31 = vmax.f32 %v210_v23, %v213_v29  ;;  %v197_v33 = vadd.f32 %v196_v21, %v195_v26  ;;  %vm231_vm2 = vcmask 326656   ;;  %v1056_v54 = vld [vmem:[#allocation5 + $0x3] ss:$0 sm:$0xff]  ;;  %v1060_v55 = vld [vmem:[#allocation5 + $0x1f] ss:$0 sm:$0xff] }
  0x60   : > { %220 = vrot.lane.b32.xlu0 %v208_v24, %s1304_s15  ;;  %v192_v32 = vadd.f32 %v191_v9, %v190_v25  ;;  %vm236_vm3 = vcmask 1042432   ;;  %v1061_v56 = vld [vmem:[#allocation5 + $0x26] ss:$0 sm:$0xff]  ;;  %v1062_v57 = vld [vmem:[#allocation5 + $0x2d] ss:$0 sm:$0xff]  ;;  %vm829_vm4 = vcmask 1046528  }
  0x61   : > { %v215_v34 = vmax.f32 %v212_v28, %v214_v31  ;;  %v199_v35 = vadd.f32 %v198_v30, %v197_v33  ;;  %v1035_v62 = vld [vmem:[#allocation5] ss:$0 sm:$0xff]  ;;  %v1036_v4 = vld [vmem:[#allocation5 + $0x7] ss:$0 sm:$0xff]  ;;  %v1037_v5 = vld [vmem:[#allocation5 + $0xe] ss:$0 sm:$0xff] }
  0x62   : > { %v216_v36 = vmul.f32 0.25, %v192_v32  ;;  %v1038_v6 = vld [vmem:[#allocation5 + $0x15] ss:$0 sm:$0xff]  ;;  %v1039_v11 = vld [vmem:[#allocation5 + $0x1c] ss:$0 sm:$0xff]  ;;  %vm842_vm5 = vcmask 1045504  }
  0x63   : > { %v217_v38 = vmul.f32 0.25, %v199_v35  ;;  %v1040_v12 = vld [vmem:[#allocation5 + $0x23] ss:$0 sm:$0xff]  ;;  %v1041_v13 = vld [vmem:[#allocation5 + $0x2a] ss:$0 sm:$0xff]  ;;  %vm855_vm6 = vcmask 1044480  }
  0x64   : > { %222 = vrot.lane.b32.xlu0 %v215_v34, %s1304_s15  ;;  %v226_v37 = vsel %vm185_vm0, %v216_v36, 0.0  ;;  %v1042_v36 = vld [vmem:[#allocation5 + $0x1] ss:$0 sm:$0xff]  ;;  %vm868_vm7 = vcmask 1043456   ;;  %vm893_vm8 = vcmask 1041408   ;;  %s1034_s6 = sshll.u32 %s1475_s19, 4 }
  0x65   : > { %v227_v42 = vsel %vm185_vm0, %v217_v38, 0.0  ;;  %s1092_s7 = sshll.u32 %s1351_s13, 8  ;;  %s176_s20 = scalar_lea.vmem [#allocation7], %s1034_s6 }
  0x66   : > { %s941_s18 = sshll.u32 %s176_s20, 4  ;;  %s1790_s26 = scalar_lea.hbm %s1839_s2, %s1092_s7  ;;  %s1792_s18 = int_to_ptr.vmem [resolvable:$true] %s941_s18 }
  0x67   : > { %s928_s29 = scalar_lea.sflag [#allocation4], %s1475_s19  ;;  %s1228_s13 = scalar_lea.vmem %s1792_s18, 256 }
  0x68   : > { %p1229_p4 = scmp.ne.s32.totalorder %s1792_s18, %s1228_s13  ;;  %s1312_s30 = smov [#allocation7]  }
  0x69   : > { %s1232_s3 = sshll.u32 %s1312_s30, 4  ;;  %s1233_s3 = int_to_ptr.vmem [resolvable:$false] %s1232_s3 }
  0x6a   : > { %p1230_p6 = pnand %p1229_p4, %p1424_p12  ;;  %s1234_s15 = scalar_lea.vmem %s1233_s3, 512 }
  0x6b   : > { %p1235_p10 = scmp.lt.s32.totalorder %s1792_s18, %s1233_s3  ;;  %p1236_p13 = scmp.lt.s32.totalorder %s1234_s15, %s1228_s13 }
  0x6c   : > { %p1231_p8 = pneg %p1230_p6 }
  0x6d   : > { %p1237_p3 = por %p1236_p13, %p1235_p10 }
  0x6f   : > { %p1238_p7 = pnand %p1237_p3, %p1231_p8 }
  0xd2   : > { %v221_v39 = vpop.permute.xlu0 %220 }
  0xd3   : > { %v229_v40 = vsel %vm228_vm1, %v226_v37, %v221_v39  ;;  %v1043_v37 = vld [vmem:[#allocation5 + $0x8] ss:$0 sm:$0xff] }
  0xd4   : > { %v232_v41 = vsel %vm231_vm2, %v229_v40, 0.0 }
  0xd5   : > { %v237_v43 = vrot.slane %v232_v41, 5 }
  0xd6   : > { %v223_v44 = vpop.permute.xlu0 %222 }
  0xd7   : > { %v243_v45 = vsel %vm236_vm3, 0.0, %v237_v43  ;;  %v230_v46 = vsel %vm228_vm1, %v227_v42, %v223_v44  ;;  %v1044_v42 = vld [vmem:[#allocation5 + $0xf] ss:$0 sm:$0xff] }
  0xd8   : > { %v233_v47 = vsel %vm231_vm2, %v230_v46, 0.0  ;;  %247 = vrot.lane.b32.xlu1 %v243_v45, %s1305_s17  ;;  %v1508_v58 = vmul.f32 %v1056_v54, %v243_v45  ;;  %v1510_v59 = vmul.f32 %v1057_v51, %v243_v45  ;;  %v1512_v60 = vmul.f32 %v1058_v52, %v243_v45 }
  0xd9   : > { %v238_v48 = vrot.slane %v233_v47, 5  ;;  %v1514_v61 = vmul.f32 %v1059_v53, %v243_v45  ;;  %v1518_v1 = vmul.f32 %v1060_v55, %v243_v45  ;;  %v1520_v2 = vmul.f32 %v1061_v56, %v243_v45 }
  0xda   : > { %v1522_v3 = vmul.f32 %v1062_v57, %v243_v45 }
  0xdb   : > { %v239_v49 = vsel %vm236_vm3, %v237_v43, %v238_v48  ;;  %v244_v50 = vsel %vm236_vm3, %v238_v48, 0.0  ;;  %1854 = vst [vmem:[#allocation11_spill] sm:$0xff] %v1514_v61  ;;  %1855 = vst [vmem:[#allocation12_spill] sm:$0xff] %v1518_v1  ;;  %v1045_v43 = vld [vmem:[#allocation5 + $0x16] ss:$0 sm:$0xff] }
  0xdc   : > { %251 = vrot.lane.b32.xlu0 %v244_v50, %s1305_s17  ;;  %249 = vrot.lane.b32.xlu1 %v239_v49, %s1305_s17  ;;  %v1516_v0 = vmul.f32 %v1057_v51, %v239_v49  ;;  %1856 = vst [vmem:[#allocation13_spill] sm:$0xff] %v1520_v2  ;;  %1857 = vst [vmem:[#allocation14_spill] sm:$0xff] %v1522_v3  ;;  %v1524_v7 = vmul.f32 %v1058_v52, %v239_v49 }
  0xdd   : > { %v1526_v8 = vmul.f32 %v1059_v53, %v239_v49  ;;  %v1528_v9 = vmul.f32 %v1060_v55, %v239_v49  ;;  %v1530_v10 = vmul.f32 %v1056_v54, %v239_v49  ;;  %v1532_v14 = vmul.f32 %v1057_v51, %v244_v50  ;;  %v1558_v54 = vld [vmem:[#allocation5 + $0x2] ss:$0 sm:$0xff] }
  0xde   : > { %v1534_v15 = vmul.f32 %v1058_v52, %v244_v50  ;;  %v1536_v16 = vmul.f32 %v1059_v53, %v244_v50  ;;  %v1538_v17 = vmul.f32 %v1060_v55, %v244_v50  ;;  %v1540_v18 = vmul.f32 %v1061_v56, %v244_v50 }
  0xdf   : > { %v1542_v19 = vmul.f32 %v1062_v57, %v244_v50  ;;  %v1544_v20 = vmul.f32 %v1061_v56, %v239_v49  ;;  %v1546_v21 = vmul.f32 %v1062_v57, %v239_v49 }
  0xe0   : > { %333 = vrot.lane.b32.xlu0 %v239_v49, %s1306_s4  ;;  %331 = vrot.lane.b32.xlu1 %v243_v45, %s1306_s4  ;;  %1858 = vst [vmem:[#allocation15_spill] sm:$0xff] %v1536_v16  ;;  %1859 = vst [vmem:[#allocation16_spill] sm:$0xff] %v1538_v17 }
  0xe1   : > { %1860 = vst [vmem:[#allocation17_spill] sm:$0xff] %v1540_v18  ;;  %1861 = vst [vmem:[#allocation18_spill] sm:$0xff] %v1542_v19 }
  0xe2   : > { %1862 = vst [vmem:[#allocation19_spill] sm:$0xff] %v1544_v20  ;;  %1863 = vst [vmem:[#allocation20_spill] sm:$0xff] %v1546_v21 }
  0xe4   : > { %415 = vrot.lane.b32.xlu0 %v243_v45, %s1307_s5  ;;  %335 = vrot.lane.b32.xlu1 %v244_v50, %s1306_s4 }
  0xe8   : > { %419 = vrot.lane.b32.xlu0 %v244_v50, %s1307_s5  ;;  %417 = vrot.lane.b32.xlu1 %v239_v49, %s1307_s5 }
  0xec   : > { %576 = vrot.lane.b32.xlu0 %v239_v49, %s1308_s27  ;;  %574 = vrot.lane.b32.xlu1 %v243_v45, %s1308_s27 }
  0xf0   : > { %658 = vrot.lane.b32.xlu0 %v243_v45, %s1309_s22  ;;  %578 = vrot.lane.b32.xlu1 %v244_v50, %s1308_s27 }
  0xf4   : > { %662 = vrot.lane.b32.xlu0 %v244_v50, %s1309_s22  ;;  %660 = vrot.lane.b32.xlu1 %v239_v49, %s1309_s22 }
  0xf8   : > { %744 = vrot.lane.b32.xlu0 %v239_v49, %s1310_s23  ;;  %742 = vrot.lane.b32.xlu1 %v243_v45, %s1310_s23 }
  0xfc   : > { %746 = vrot.lane.b32.xlu1 %v244_v50, %s1310_s23 }
 0x14a   : > { %v248_v63 = vpop.permute.xlu1 %247 }
 0x14b   : > { %v261_v22 = vmul.f32 %v1035_v62, %v248_v63  ;;  %v270_v24 = vmul.f32 %v1036_v4, %v248_v63  ;;  %v281_v25 = vmul.f32 %v1037_v5, %v248_v63  ;;  %v292_v26 = vmul.f32 %v1038_v6, %v248_v63 }
 0x14c   : > { %v303_v29 = vmul.f32 %v1039_v11, %v248_v63  ;;  %v314_v30 = vmul.f32 %v1040_v12, %v248_v63  ;;  %v325_v31 = vmul.f32 %v1041_v13, %v248_v63  ;;  %v1046_v63 = vld [vmem:[#allocation5 + $0x1d] ss:$0 sm:$0xff] }
 0x14e   : > { %v252_v23 = vpop.permute.xlu0 %251  ;;  %v250_v27 = vpop.permute.xlu1 %249 }
 0x14f   : > { %v272_v28 = vmul.f32 %v1036_v4, %v252_v23  ;;  %v1548_v32 = vmul.f32 %v1037_v5, %v252_v23  ;;  %v1550_v33 = vmul.f32 %v1038_v6, %v252_v23  ;;  %v1552_v34 = vmul.f32 %v1039_v11, %v252_v23 }
 0x150   : > { %v1554_v35 = vmul.f32 %v1040_v12, %v252_v23  ;;  %v1556_v38 = vmul.f32 %v1041_v13, %v252_v23  ;;  %v262_v39 = vmul.f32 %v1035_v62, %v250_v27  ;;  %v271_v40 = vmul.f32 %v1036_v4, %v250_v27  ;;  %v1047_v4 = vld [vmem:[#allocation5 + $0x24] ss:$0 sm:$0xff] }
 0x151   : > { %v282_v41 = vmul.f32 %v1037_v5, %v250_v27  ;;  %v293_v44 = vmul.f32 %v1038_v6, %v250_v27  ;;  %v304_v45 = vmul.f32 %v1039_v11, %v250_v27  ;;  %v315_v46 = vmul.f32 %v1040_v12, %v250_v27 }
 0x152   : > { %v326_v47 = vmul.f32 %v1041_v13, %v250_v27  ;;  %v334_v48 = vpop.permute.xlu0 %333  ;;  %v332_v49 = vpop.permute.xlu1 %331  ;;  %v1048_v13 = vld [vmem:[#allocation5 + $0x2b] ss:$0 sm:$0xff] }
 0x153   : > { %v346_v50 = vmul.f32 %v1042_v36, %v334_v48  ;;  %v345_v51 = vmul.f32 %v1042_v36, %v332_v49  ;;  %v354_v52 = vmul.f32 %v1043_v37, %v332_v49  ;;  %v355_v53 = vmul.f32 %v1043_v37, %v334_v48 }
 0x154   : > { %v365_v55 = vmul.f32 %v1044_v42, %v332_v49  ;;  %v366_v56 = vmul.f32 %v1044_v42, %v334_v48  ;;  %v376_v57 = vmul.f32 %v1045_v43, %v332_v49  ;;  %v377_v62 = vmul.f32 %v1045_v43, %v334_v48 }
 0x155   : > { %v1560_v5 = vadd.f32 %v346_v50, %v262_v39  ;;  %v347_v6 = vadd.f32 %v345_v51, %v261_v22  ;;  %v357_v11 = vadd.f32 %v354_v52, %v270_v24  ;;  %v1562_v12 = vadd.f32 %v355_v53, %v271_v40  ;;  %v1051_v53 = vld [vmem:[#allocation5 + $0x10] ss:$0 sm:$0xff] }
 0x156   : > { %v416_v23 = vpop.permute.xlu0 %415  ;;  %v368_v27 = vadd.f32 %v365_v55, %v281_v25  ;;  %v1564_v36 = vadd.f32 %v366_v56, %v282_v41  ;;  %v379_v21 = vadd.f32 %v376_v57, %v292_v26  ;;  %v1566_v3 = vadd.f32 %v377_v62, %v293_v44  ;;  %v336_v20 = vpop.permute.xlu1 %335  ;;  %v1050_v41 = vld [vmem:[#allocation5 + $0x9] ss:$0 sm:$0xff]  ;;  %v1052_v26 = vld [vmem:[#allocation5 + $0x17] ss:$0 sm:$0xff] }
 0x157   : > { %v429_v2 = vmul.f32 %v1558_v54, %v416_v23  ;;  %v387_v1 = vmul.f32 %v1046_v63, %v332_v49  ;;  %v388_v19 = vmul.f32 %v1046_v63, %v334_v48  ;;  %v398_v18 = vmul.f32 %v1047_v4, %v332_v49 }
 0x158   : > { %v399_v39 = vmul.f32 %v1047_v4, %v334_v48  ;;  %v409_v50 = vmul.f32 %v1048_v13, %v332_v49  ;;  %v410_v22 = vmul.f32 %v1048_v13, %v334_v48  ;;  %v356_v24 = vmul.f32 %v1043_v37, %v336_v20  ;;  %v1053_v37 = vld [vmem:[#allocation5 + $0x1e] ss:$0 sm:$0xff] }
 0x159   : > { %v1569_v40 = vadd.f32 %v429_v2, %v347_v6  ;;  %v390_v51 = vadd.f32 %v387_v1, %v303_v29  ;;  %v391_v52 = vadd.f32 %v388_v19, %v304_v45  ;;  %v401_v25 = vadd.f32 %v398_v18, %v314_v30  ;;  %v1054_v2 = vld [vmem:[#allocation5 + $0x25] ss:$0 sm:$0xff]  ;;  %v1055_v6 = vld [vmem:[#allocation5 + $0x2c] ss:$0 sm:$0xff] }
 0x15a   : > { %v402_v44 = vadd.f32 %v399_v39, %v315_v46  ;;  %v1571_v55 = vadd.f32 %v409_v50, %v325_v31  ;;  %v413_v56 = vadd.f32 %v410_v22, %v326_v47  ;;  %v359_v57 = vadd.f32 %v356_v24, %v272_v28  ;;  %v420_v62 = vpop.permute.xlu0 %419  ;;  %v418_v17 = vpop.permute.xlu1 %417 }
 0x15b   : > { %v367_v16 = vmul.f32 %v1044_v42, %v336_v20  ;;  %v378_v61 = vmul.f32 %v1045_v43, %v336_v20  ;;  %v389_v49 = vmul.f32 %v1046_v63, %v336_v20  ;;  %v400_v48 = vmul.f32 %v1047_v4, %v336_v20 }
 0x15c   : > { %v411_v1 = vmul.f32 %v1048_v13, %v336_v20  ;;  %v438_v19 = vmul.f32 %v1050_v41, %v416_v23  ;;  %v449_v18 = vmul.f32 %v1051_v53, %v416_v23  ;;  %v460_v29 = vmul.f32 %v1052_v26, %v416_v23 }
 0x15d   : > { %v370_v30 = vadd.f32 %v367_v16, %v1548_v32  ;;  %v381_v31 = vadd.f32 %v378_v61, %v1550_v33  ;;  %v392_v45 = vadd.f32 %v389_v49, %v1552_v34  ;;  %v403_v28 = vadd.f32 %v400_v48, %v1554_v35 }
 0x15e   : > { %v414_v42 = vadd.f32 %v411_v1, %v1556_v38  ;;  %v471_v43 = vmul.f32 %v1053_v37, %v416_v23  ;;  %v482_v46 = vmul.f32 %v1054_v2, %v416_v23  ;;  %v1578_v47 = vmul.f32 %v1055_v6, %v416_v23  ;;  %v1582_v61 = vpop.permute.xlu0 %576  ;;  %v1584_v32 = vpop.permute.xlu1 %574 }
 0x15f   : > { %v440_v63 = vmul.f32 %v1050_v41, %v420_v62  ;;  %v441_v4 = vadd.f32 %v438_v19, %v357_v11  ;;  %v451_v20 = vmul.f32 %v1051_v53, %v420_v62  ;;  %v452_v13 = vadd.f32 %v449_v18, %v368_v27 }
 0x160   : > { %v462_v39 = vmul.f32 %v1052_v26, %v420_v62  ;;  %v463_v50 = vadd.f32 %v460_v29, %v379_v21  ;;  %v473_v22 = vmul.f32 %v1053_v37, %v420_v62  ;;  %v1580_v16 = vadd.f32 %v471_v43, %v390_v51  ;;  %v1063_v51 = vld [vmem:[#allocation5 + $0x4] ss:$0 sm:$0xff] }
 0x161   : > { %v443_v33 = vadd.f32 %v440_v63, %v359_v57  ;;  %v454_v34 = vadd.f32 %v451_v20, %v370_v30  ;;  %v484_v35 = vmul.f32 %v1054_v2, %v420_v62  ;;  %v1586_v38 = vadd.f32 %v482_v46, %v401_v25  ;;  %v1865_v63 = vld [vmem:[#allocation15_spill] sm:$0xff]  ;;  %v1067_v20 = vld [vmem:[#allocation5 + $0x20] ss:$0 sm:$0xff] }
 0x162   : > { %v465_v23 = vadd.f32 %v462_v39, %v381_v31  ;;  %v476_v24 = vadd.f32 %v473_v22, %v392_v45  ;;  %v495_v49 = vmul.f32 %v1055_v6, %v420_v62  ;;  %v430_v11 = vmul.f32 %v1558_v54, %v418_v17  ;;  %v1866_v39 = vld [vmem:[#allocation16_spill] sm:$0xff] }
 0x163   : > { %v487_v27 = vadd.f32 %v484_v35, %v403_v28  ;;  %v439_v48 = vmul.f32 %v1050_v41, %v418_v17  ;;  %v450_v21 = vmul.f32 %v1051_v53, %v418_v17  ;;  %v461_v1 = vmul.f32 %v1052_v26, %v418_v17  ;;  %v1597_v53 = vld [vmem:[#allocation5 + $0x5] ss:$0 sm:$0xff]  ;;  %v1599_v26 = vpop.permute.xlu0 %658  ;;  %v1867_v35 = vld [vmem:[#allocation17_spill] sm:$0xff] }
 0x164   : > { %v498_v19 = vadd.f32 %v495_v49, %v414_v42  ;;  %v432_v18 = vadd.f32 %v430_v11, %v1560_v5  ;;  %v472_v29 = vmul.f32 %v1053_v37, %v418_v17  ;;  %v483_v43 = vmul.f32 %v1054_v2, %v418_v17  ;;  %v579_v5 = vpop.permute.xlu1 %578  ;;  %v1064_v2 = vld [vmem:[#allocation5 + $0xb] ss:$0 sm:$0xff]  ;;  %v1864_v42 = vld [vmem:[#allocation11_spill] sm:$0xff]  ;;  %v1868_v11 = vld [vmem:[#allocation18_spill] sm:$0xff] }
 0x165   : > { %v442_v57 = vadd.f32 %v439_v48, %v1562_v12  ;;  %v453_v25 = vadd.f32 %v450_v21, %v1564_v36  ;;  %v464_v30 = vadd.f32 %v461_v1, %v1566_v3  ;;  %v494_v31 = vmul.f32 %v1055_v6, %v418_v17  ;;  %v1065_v6 = vld [vmem:[#allocation5 + $0x12] ss:$0 sm:$0xff] }
 0x166   : > { %v475_v62 = vadd.f32 %v472_v29, %v391_v52  ;;  %v1593_v45 = vadd.f32 %v483_v43, %v402_v44  ;;  %v507_v54 = vadd.f32 %v1530_v10, %v432_v18  ;;  %v589_v41 = vmul.f32 %v1063_v51, %v1582_v61 }
 0x167   : > { %v1601_v37 = vadd.f32 %v494_v31, %v413_v56  ;;  %v517_v12 = vadd.f32 %v1516_v0, %v442_v57  ;;  %v528_v36 = vadd.f32 %v1524_v7, %v453_v25  ;;  %v539_v3 = vadd.f32 %v1526_v8, %v464_v30  ;;  %v1071_v57 = vld [vmem:[#allocation5 + $0xc] ss:$0 sm:$0xff]  ;;  %v1072_v25 = vld [vmem:[#allocation5 + $0x13] ss:$0 sm:$0xff]  ;;  %v1649_v30 = vld [vmem:[#allocation5 + $0x2e] ss:$0 sm:$0xff] }
 0x168   : > { %v1607_v17 = vadd.f32 %v1528_v9, %v475_v62  ;;  %v1609_v52 = vadd.f32 %v589_v41, %v507_v54  ;;  %v506_v10 = vadd.f32 %v1508_v58, %v1569_v40  ;;  %v588_v44 = vmul.f32 %v1063_v51, %v1584_v32  ;;  %v1066_v40 = vld [vmem:[#allocation5 + $0x19] ss:$0 sm:$0xff] }
 0x169   : > { %v672_v56 = vmul.f32 %v1597_v53, %v1599_v26  ;;  %v516_v0 = vadd.f32 %v1510_v59, %v441_v4  ;;  %v518_v7 = vadd.f32 %v1532_v14, %v443_v33  ;;  %v527_v8 = vadd.f32 %v1512_v60, %v452_v13  ;;  %v1068_v4 = vld [vmem:[#allocation5 + $0x27] ss:$0 sm:$0xff]  ;;  %v1631_v33 = vpop.permute.xlu1 %660 }
 0x16a   : > { %v590_v9 = vadd.f32 %v588_v44, %v506_v10  ;;  %v529_v28 = vadd.f32 %v1534_v15, %v454_v34  ;;  %v538_v46 = vadd.f32 %v1864_v42, %v463_v50  ;;  %v540_v58 = vadd.f32 %v1865_v63, %v465_v23  ;;  %v1073_v10 = vld [vmem:[#allocation5 + $0x1a] ss:$0 sm:$0xff]  ;;  %v1074_v44 = vld [vmem:[#allocation5 + $0x21] ss:$0 sm:$0xff] }
 0x16b   : > { %v551_v22 = vadd.f32 %v1866_v39, %v476_v24  ;;  %v562_v49 = vadd.f32 %v1867_v35, %v487_v27  ;;  %v573_v59 = vadd.f32 %v1868_v11, %v498_v19  ;;  %v597_v14 = vmul.f32 %v1064_v2, %v1584_v32 }
 0x16c   : > { %v1626_v60 = vadd.f32 %v672_v56, %v590_v9  ;;  %v598_v13 = vmul.f32 %v1064_v2, %v1582_v61  ;;  %v608_v15 = vmul.f32 %v1065_v6, %v1584_v32  ;;  %v609_v50 = vmul.f32 %v1065_v6, %v1582_v61  ;;  %v663_v56 = vpop.permute.xlu0 %662 }
 0x16d   : > { %v600_v34 = vadd.f32 %v597_v14, %v516_v0  ;;  %v619_v23 = vmul.f32 %v1066_v40, %v1584_v32  ;;  %v620_v24 = vmul.f32 %v1066_v40, %v1582_v61  ;;  %v1636_v27 = vmul.f32 %v1067_v20, %v1584_v32  ;;  %v1654_v63 = vpop.permute.xlu1 %742 }
 0x16e   : > { %v611_v48 = vadd.f32 %v608_v15, %v527_v8  ;;  %v1639_v21 = vmul.f32 %v1067_v20, %v1582_v61  ;;  %v1642_v1 = vmul.f32 %v1068_v4, %v1584_v32  ;;  %v1645_v51 = vmul.f32 %v1068_v4, %v1582_v61 }
 0x16f   : > { %v1647_v19 = vadd.f32 %v619_v23, %v538_v46  ;;  %v599_v18 = vmul.f32 %v1064_v2, %v579_v5  ;;  %v601_v29 = vadd.f32 %v598_v13, %v517_v12  ;;  %v610_v43 = vmul.f32 %v1065_v6, %v579_v5 }
 0x170   : > { %v612_v31 = vadd.f32 %v609_v50, %v528_v36  ;;  %v621_v62 = vmul.f32 %v1066_v40, %v579_v5  ;;  %v623_v54 = vadd.f32 %v620_v24, %v539_v3  ;;  %v632_v41 = vmul.f32 %v1067_v20, %v579_v5  ;;  %v1077_v50 = vld [vmem:[#allocation5 + $0x6] ss:$0 sm:$0xff]  ;;  %v1677_v23 = vpop.permute.xlu0 %744 }
 0x171   : > { %v602_v0 = vadd.f32 %v599_v18, %v518_v7  ;;  %v613_v8 = vadd.f32 %v610_v43, %v529_v28  ;;  %v643_v9 = vmul.f32 %v1068_v4, %v579_v5  ;;  %v654_v42 = vmul.f32 %v1649_v30, %v579_v5  ;;  %v1664_v28 = vld [vmem:[#allocation5 + $0x28] ss:$0 sm:$0xff]  ;;  %v1666_v5 = vld [vmem:[#allocation5 + $0x2f] ss:$0 sm:$0xff]  ;;  %v1078_v43 = vld [vmem:[#allocation5 + $0xd] ss:$0 sm:$0xff] }
 0x172   : > { %v624_v46 = vadd.f32 %v621_v62, %v540_v58  ;;  %v635_v2 = vadd.f32 %v632_v41, %v551_v22  ;;  %v681_v12 = vmul.f32 %v1071_v57, %v1599_v26  ;;  %v692_v6 = vmul.f32 %v1072_v25, %v1599_v26  ;;  %v1079_v62 = vld [vmem:[#allocation5 + $0x14] ss:$0 sm:$0xff] }
 0x173   : > { %v646_v36 = vadd.f32 %v643_v9, %v562_v49  ;;  %v1656_v40 = vadd.f32 %v654_v42, %v573_v59  ;;  %v1659_v3 = vmul.f32 %v1073_v10, %v1599_v26  ;;  %v1662_v7 = vmul.f32 %v1074_v44, %v1599_v26 }
 0x174   : > { %v683_v58 = vmul.f32 %v1071_v57, %v663_v56  ;;  %v684_v20 = vadd.f32 %v681_v12, %v600_v34  ;;  %v694_v39 = vmul.f32 %v1072_v25, %v663_v56  ;;  %v1668_v22 = vadd.f32 %v692_v6, %v611_v48 }
 0x175   : > { %v705_v35 = vmul.f32 %v1073_v10, %v663_v56  ;;  %v716_v11 = vmul.f32 %v1074_v44, %v663_v56  ;;  %v727_v49 = vmul.f32 %v1664_v28, %v663_v56  ;;  %v1672_v59 = vmul.f32 %v1666_v5, %v663_v56 }
 0x176   : > { %v686_v14 = vadd.f32 %v683_v58, %v602_v0  ;;  %v697_v4 = vadd.f32 %v694_v39, %v613_v8  ;;  %v673_v13 = vmul.f32 %v1597_v53, %v1631_v33  ;;  %v682_v15 = vmul.f32 %v1071_v57, %v1631_v33  ;;  %v1080_v57 = vld [vmem:[#allocation5 + $0x1b] ss:$0 sm:$0xff]  ;;  %v747_v8 = vpop.permute.xlu1 %746  ;;  %v1081_v58 = vld [vmem:[#allocation5 + $0x22] ss:$0 sm:$0xff]  ;;  %v1082_v39 = vld [vmem:[#allocation5 + $0x29] ss:$0 sm:$0xff] }
 0x177   : > { %v708_v34 = vadd.f32 %v705_v35, %v624_v46  ;;  %v719_v24 = vadd.f32 %v716_v11, %v635_v2  ;;  %v1679_v48 = vadd.f32 %v727_v49, %v646_v36  ;;  %v693_v18 = vmul.f32 %v1072_v25, %v1631_v33  ;;  %v1083_v35 = vld [vmem:[#allocation5 + $0x30] ss:$0 sm:$0xff] }
 0x178   : > { %v1683_v41 = vadd.f32 %v673_v13, %v1609_v52  ;;  %v685_v56 = vadd.f32 %v682_v15, %v601_v29  ;;  %v704_v0 = vmul.f32 %v1073_v10, %v1631_v33  ;;  %v715_v53 = vmul.f32 %v1074_v44, %v1631_v33 }
 0x179   : > { %1869 = vst [vmem:[#allocation11_spill] sm:$0xff] %v1679_v48  ;;  %v696_v9 = vadd.f32 %v693_v18, %v612_v31  ;;  %v726_v42 = vmul.f32 %v1664_v28, %v1631_v33  ;;  %v1690_v46 = vmul.f32 %v1077_v50, %v1677_v23  ;;  %v756_v25 = vmul.f32 %v1077_v50, %v1654_v63 }
 0x17a   : > { %v707_v2 = vadd.f32 %v704_v0, %v623_v54  ;;  %v765_v52 = vmul.f32 %v1078_v43, %v1654_v63  ;;  %v766_v29 = vmul.f32 %v1078_v43, %v1677_v23  ;;  %v776_v10 = vmul.f32 %v1079_v62, %v1654_v63 }
 0x17b   : > { %v777_v44 = vmul.f32 %v1079_v62, %v1677_v23  ;;  %v787_v12 = vmul.f32 %v1080_v57, %v1654_v63  ;;  %v788_v31 = vmul.f32 %v1080_v57, %v1677_v23  ;;  %v767_v6 = vmul.f32 %v1078_v43, %v747_v8 }
 0x17c   : > { %v768_v36 = vadd.f32 %v765_v52, %v684_v20  ;;  %v1699_v11 = vadd.f32 %v766_v29, %v685_v56  ;;  %v778_v54 = vmul.f32 %v1079_v62, %v747_v8  ;;  %v789_v49 = vmul.f32 %v1080_v57, %v747_v8  ;;  %v1870_v56 = vld [vmem:[#allocation12_spill] sm:$0xff] }
 0x17d   : > { %v1701_v13 = vadd.f32 %v767_v6, %v686_v14  ;;  %v800_v15 = vmul.f32 %v1081_v58, %v747_v8  ;;  %v1703_v50 = vmul.f32 %v1082_v39, %v747_v8  ;;  %v1705_v18 = vmul.f32 %v1083_v35, %v747_v8  ;;  %v1872_v6 = vld [vmem:[#allocation19_spill] sm:$0xff] }
 0x17e   : > { %v830_v0 = vrot.slane %v768_v36, 1  ;;  %v1707_v48 = vadd.f32 %v778_v54, %v697_v4  ;;  %v1709_v43 = vadd.f32 %v789_v49, %v708_v34  ;;  %v831_v20 = vrot.slane %v1699_v11, 1  ;;  %v1871_v4 = vld [vmem:[#allocation13_spill] sm:$0xff]  ;;  %v1874_v49 = vld [vmem:[#allocation20_spill] sm:$0xff] }
 0x17f   : > { %v1712_v52 = vadd.f32 %v800_v15, %v719_v24  ;;  %v833_v62 = vrot.slane %v1701_v13, 1  ;;  %v496_v14 = vadd.f32 %v1578_v47, %v1571_v55  ;;  %v549_v57 = vadd.f32 %v1870_v56, %v1580_v16  ;;  %v1873_v24 = vld [vmem:[#allocation14_spill] sm:$0xff] }
 0x180   : > { %v846_v8 = vrot.slane %v1707_v48, 2  ;;  %v859_v29 = vrot.slane %v1709_v43, 3  ;;  %v560_v34 = vadd.f32 %v1871_v4, %v1586_v38  ;;  %v561_v36 = vadd.f32 %v1872_v6, %v1593_v45 }
 0x181   : > { %v571_v54 = vadd.f32 %v1873_v24, %v496_v14  ;;  %v572_v15 = vadd.f32 %v1874_v49, %v1601_v37  ;;  %v633_v55 = vadd.f32 %v1636_v27, %v549_v57  ;;  %v634_v47 = vadd.f32 %v1639_v21, %v1607_v17 }
 0x182   : > { %v644_v16 = vadd.f32 %v1642_v1, %v560_v34  ;;  %v645_v56 = vadd.f32 %v1645_v51, %v561_v36  ;;  %v652_v38 = vmul.f32 %v1649_v30, %v1584_v32  ;;  %v653_v45 = vmul.f32 %v1649_v30, %v1582_v61 }
 0x183   : > { %v706_v37 = vadd.f32 %v1659_v3, %v1647_v19  ;;  %v717_v27 = vadd.f32 %v1662_v7, %v633_v55  ;;  %v718_v14 = vadd.f32 %v715_v53, %v634_v47  ;;  %v725_v17 = vmul.f32 %v1664_v28, %v1599_v26 }
 0x184   : > { %v655_v21 = vadd.f32 %v652_v38, %v571_v54  ;;  %v656_v1 = vadd.f32 %v653_v45, %v572_v15  ;;  %v729_v51 = vadd.f32 %v726_v42, %v645_v56  ;;  %v736_v32 = vmul.f32 %v1666_v5, %v1599_v26 }
 0x185   : > { %v728_v61 = vadd.f32 %v725_v17, %v644_v16  ;;  %v737_v30 = vmul.f32 %v1666_v5, %v1631_v33  ;;  %v758_v19 = vadd.f32 %v756_v25, %v1626_v60  ;;  %v779_v3 = vadd.f32 %v776_v10, %v1668_v22 }
 0x186   : > { %v739_v7 = vadd.f32 %v736_v32, %v655_v21  ;;  %v780_v53 = vadd.f32 %v777_v44, %v696_v9  ;;  %v790_v57 = vadd.f32 %v787_v12, %v706_v37  ;;  %v791_v28 = vadd.f32 %v788_v31, %v707_v2  ;;  %v1875_v37 = vld [vmem:[#allocation11_spill] sm:$0xff] }
 0x187   : > { %v740_v4 = vadd.f32 %v737_v30, %v656_v1  ;;  %v798_v34 = vmul.f32 %v1081_v58, %v1654_v63  ;;  %v799_v42 = vmul.f32 %v1081_v58, %v1677_v23  ;;  %v809_v26 = vmul.f32 %v1082_v39, %v1654_v63 }
 0x188   : > { %v810_v6 = vmul.f32 %v1082_v39, %v1677_v23  ;;  %v820_v36 = vmul.f32 %v1083_v35, %v1654_v63  ;;  %v821_v33 = vmul.f32 %v1083_v35, %v1677_v23  ;;  %v832_v60 = vsel %vm829_vm4, %v830_v0, %v831_v20 }
 0x189   : > { %v801_v5 = vadd.f32 %v798_v34, %v717_v27  ;;  %v802_v22 = vadd.f32 %v799_v42, %v718_v14  ;;  %v812_v9 = vadd.f32 %v809_v26, %v728_v61  ;;  %v837_v25 = vadd.f32 %v832_v60, %v758_v19 }
 0x18a   : > { %v813_v2 = vadd.f32 %v810_v6, %v729_v51  ;;  %v823_v10 = vadd.f32 %v820_v36, %v739_v7  ;;  %v824_v44 = vadd.f32 %v821_v33, %v740_v4  ;;  %v843_v12 = vrot.slane %v779_v3, 2 }
 0x18b   : > { %v844_v31 = vrot.slane %v780_v53, 2  ;;  %v856_v58 = vrot.slane %v790_v57, 3  ;;  %v857_v24 = vrot.slane %v791_v28, 3  ;;  %v869_v39 = vrot.slane %v801_v5, 4 }
 0x18c   : > { %v870_v54 = vrot.slane %v802_v22, 4  ;;  %v881_v63 = vrot.slane %v812_v9, 5  ;;  %v882_v49 = vrot.slane %v813_v2, 5  ;;  %v894_v23 = vrot.slane %v823_v10, 6 }
 0x18d   : > { %v845_v35 = vsel %vm842_vm5, %v843_v12, %v844_v31  ;;  %v858_v0 = vsel %vm855_vm6, %v856_v58, %v857_v24  ;;  %v895_v15 = vrot.slane %v824_v44, 6  ;;  %v741_v55 = vadd.f32 %v1672_v59, %v1656_v40 }
 0x18e   : > { %v850_v47 = vadd.f32 %v845_v35, %v837_v25  ;;  %v871_v16 = vsel %vm868_vm7, %v869_v39, %v870_v54  ;;  %v883_v56 = vsel %vm236_vm3, %v881_v63, %v882_v49  ;;  %v759_v38 = vadd.f32 %v1690_v46, %v1683_v41 }
 0x18f   : > { %v896_v45 = vsel %vm893_vm8, %v894_v23, %v895_v15  ;;  %v814_v27 = vadd.f32 %v1703_v50, %v1875_v37  ;;  %v825_v14 = vadd.f32 %v1705_v18, %v741_v55  ;;  %v834_v40 = vsel %vm829_vm4, %v831_v20, %v833_v62 }
 0x190   : > { %v863_v59 = vadd.f32 %v858_v0, %v850_v47  ;;  %v838_v17 = vadd.f32 %v834_v40, %v759_v38  ;;  %v847_v21 = vsel %vm842_vm5, %v844_v31, %v846_v8  ;;  %v860_v41 = vsel %vm855_vm6, %v857_v24, %v859_v29 }
 0x191   : > { %v872_v46 = vrot.slane %v1712_v52, 4  ;;  %v884_v50 = vrot.slane %v814_v27, 5  ;;  %v897_v18 = vrot.slane %v825_v14, 6 }
 0x192   : > { %v876_v1 = vadd.f32 %v871_v16, %v863_v59  ;;  %v851_v13 = vadd.f32 %v847_v21, %v838_v17 }
 0x193   : > { %v873_v11 = vsel %vm868_vm7, %v870_v54, %v872_v46  ;;  %v885_v20 = vsel %vm236_vm3, %v882_v49, %v884_v50  ;;  %v898_v62 = vsel %vm893_vm8, %v895_v15, %v897_v18 }
 0x194   : > { %v888_v51 = vadd.f32 %v883_v56, %v876_v1  ;;  %v864_v48 = vadd.f32 %v860_v41, %v851_v13 }
 0x196   : > { %v901_v32 = vadd.f32 %v896_v45, %v888_v51  ;;  %v877_v8 = vadd.f32 %v873_v11, %v864_v48 }
 0x198   : > { %905 = vrot.lane.b32.xlu0 %v901_v32, %s1311_s28  ;;  %v889_v43 = vadd.f32 %v885_v20, %v877_v8 }
 0x19a   : > { %v902_v29 = vadd.f32 %v898_v62, %v889_v43 }
 0x19c   : > { %907 = vrot.lane.b32.xlu1 %v902_v29, %s1311_s28 }
 0x20a   : > { %v906_v52 = vpop.permute.xlu0 %905 }
 0x20b   : > { %v911_v61 = vadd.f32 %v906_v52, %v901_v32 }
 0x20d   : > { %v1084_v30 = vmul.f32 -1.442695, %v911_v61 }
 0x20e   : > { %v908_v19 = vpop.permute.xlu1 %907 }
 0x20f   : > { %1162 = vpow2.f32 %v1084_v30  ;;  %v912_v3 = vadd.f32 %v908_v19, %v902_v29 }
 0x211   : > { %v1085_v7 = vmul.f32 -1.442695, %v912_v3 }
 0x213   : > { %1164 = vpow2.f32 %v1085_v7 }
 0x219   : > { %v1163_v53 = vpop.eup %1162 }
 0x21a   : > { %v919_v57 = vadd.f32 1.0, %v1163_v53 }
 0x21c   : > { %1166 = vrcp.f32 %v919_v57 }
 0x21d   : > { %v1165_v28 = vpop.eup %1164 }
 0x21e   : > { %v920_v4 = vadd.f32 1.0, %v1165_v28 }
 0x220   : > { %1168 = vrcp.f32 %v920_v4 }
 0x226   : > { %v1167_v34 = vpop.eup %1166 }
 0x227   : > { %925 = vst.msk [vmem:[%s176_s20] sm:$0xff] %vm185_vm0, %v1167_v34 }
 0x22a   : > { %v1169_v42 = vpop.eup %1168 }
 0x22b   : > { %926 = vst.msk [vmem:[%s176_s20 + $0x8] sm:$0xff] %vm185_vm0, %v1169_v42 }
 0x22c   : > { %1241 = shalt.err (!%p1238_p7)
}
 0x22d   : > { %s1242_s17 = scalar_lea.hbm %s1790_s26, 256  ;;  %s1246_s27 = scalar_lea.hbm %s1839_s2, 512 }
 0x22e   : > { %p1243_p9 = scmp.ne.s32.totalorder %s1790_s26, %s1242_s17  ;;  %p1247_p5 = scmp.lt.u32.totalorder %s1790_s26, %s1839_s2 }
 0x22f   : > { %p1248_p2 = scmp.lt.u32.totalorder %s1246_s27, %s1242_s17  ;;  %p1250_p4 = scmp.lt.u32.totalorder %s1242_s17, %s1790_s26 }
 0x230   : > { %p1244_p1 = pnand %p1243_p9, %p1424_p12 }
 0x231   : > { %p1249_p11 = por %p1248_p2, %p1247_p5 }
 0x232   : > { %p1245_p0 = pneg %p1244_p1 }
 0x233   : > { %p1251_p6 = por %p1250_p4, %p1249_p11 }
 0x235   : > { %p1252_p8 = pnand %p1251_p6, %p1245_p0 }
 0x237   : > { %1255 = shalt.err (!%p1252_p8)
}
 0x238   : > { %s1313_s28 = smov 128   ;;  %s1314_s6 = smov 8  }
 0x239   : > { %1099 = dma.vmem_to_hbm [thread:$0]  (%p1424_p12), %s1792_s18, 256, %s1790_s26, %s928_s29, %s1313_s28, %s1313_s28, %s1314_s6  }
 0x23a PF: > { %s956_s7 = sand.u32 1, %s1286_s9   ;;  %p1876_p10 = scmp.ne.s32.totalorder %s1844_s16, 0 }
 0x23b   : > { %p1877_p13 = scmp.ge.s32.totalorder %s1298_s12, 2  ;;  %s957_s20 = scalar_lea.sflag [#allocation4], %s956_s7 }
 0x23d   : > { %p1110_p3 = pnand %p1877_p13, %p1876_p10 }
 0x23f   : > { %1281 = dma.done.wait (!%p1110_p3), %s957_s20, 256  }
 0x240   : > { %1283 = vsyncadd (!%p1110_p3), %s957_s20, 4294967040  ;;  %p16_p7 = scmp.ge.s32.totalorder %s1386_s21, 4   ;;  %s1878_s9 = smov %s1290_s10 }
 0x241   : > { %s1879_s10 = smov %s1294_s11  ;;  %s1880_s11 = smov %s1420_s8 }
 0x242   : > { %s1881_s12 = smov %s1386_s21  ;;  %18 = sbr.rel (!%p16_p7) target bundleno = 6 (0x6), region = 77 }
 0x249   :  { %962 = vsyncpa [#allocation3], 1 }
 0x24a   :  { %964 = vsyncpa [#allocation3 + $0x1], 1 }
 0x24b   :  { %965 = vsyncpa [#allocation6], 1 }
 0x24c   :  { %966 = vsyncpa [#allocation4], 1 }
 0x24d   :  { %968 = vsyncpa [#allocation4 + $0x1], 1 }

</bundles_post_ra>
